<compile_context>
chip_gen: v7x
topology: tpu7x:2x2x1
jax: 0.10.0
libtpu: 0.0.40
codegen_flags: <defaults>
</compile_context>

<pallas_src>
import jax
import jax.numpy as jnp
from jax.experimental import pallas as pl
from jax.experimental.pallas import tpu as pltpu

IMAGE_SIZE = 64
LABEL_DIM = 50
LATENT_DIM = 100
NUM_CLASSES = 102
IN_DIM = LATENT_DIM + LABEL_DIM            # 150
H1, H2, H3 = 256, 512, 1024
OUT_DIM = 3 * IMAGE_SIZE * IMAGE_SIZE      # 12288
TN = 3072                                  # output-feature tile for the final layer (4 steps)


# ---------------------------------------------------------------------------
# Kernel A: fused hidden MLP  (B,150) -> relu -> (B,256) -> relu -> (B,512)
#                             -> relu -> (B,1024), emitted as bf16.
# Everything (x, W1..W3, biases) fits in VMEM, single invocation (no grid).
# ---------------------------------------------------------------------------
def hidden_mlp_kernel(x_ref, w1_ref, b1_ref, w2_ref, b2_ref, w3_ref, b3_ref,
                      h3_ref):
    x = x_ref[...]
    h1 = jnp.maximum(
        jnp.dot(x, w1_ref[...], preferred_element_type=jnp.float32) + b1_ref[...],
        0.0)
    h2 = jnp.maximum(
        jnp.dot(h1, w2_ref[...], preferred_element_type=jnp.float32) + b2_ref[...],
        0.0)
    h3 = jnp.maximum(
        jnp.dot(h2, w3_ref[...], preferred_element_type=jnp.float32) + b3_ref[...],
        0.0)
    h3_ref[...] = h3.astype(h3_ref.dtype)   # bf16 for the streamed final matmul


# ---------------------------------------------------------------------------
# Kernel B: final Linear(1024 -> 12288) + Tanh, tiled over the output features.
# h3 (tiny, constant index) and a bf16 (H3, TN) slab of W4 per grid step.
# ---------------------------------------------------------------------------
def output_layer_kernel(h3_ref, w4_ref, b4_ref, out_ref):
    acc = jnp.dot(h3_ref[...], w4_ref[...], preferred_element_type=jnp.float32)
    out_ref[...] = jnp.tanh(acc + b4_ref[...])


def conditional_generator(noise, labels, params):
    """params['w4'] may be f32 or bf16; it is streamed as bf16 either way."""
    # glue: embedding gather + concat (cheap, irregular) stays in plain jnp.
    emb = jnp.take(params["emb"], labels, axis=0)             # (B, LABEL_DIM)
    gen_input = jnp.concatenate([noise, emb], axis=-1)        # (B, IN_DIM)
    B = gen_input.shape[0]

    # --- stage A: hidden layers (single VMEM-resident kernel) ---------------
    h3 = pl.pallas_call(
        hidden_mlp_kernel,
        out_shape=jax.ShapeDtypeStruct((B, H3), jnp.bfloat16),
    )(gen_input,
      params["w1"], params["b1"],
      params["w2"], params["b2"],
      params["w3"], params["b3"])

    # --- stage B: streamed output layer -------------------------------------
    w4_bf16 = params["w4"].astype(jnp.bfloat16)   # no-op if already bf16
    n_tiles = OUT_DIM // TN

    cost = pl.CostEstimate(
        flops=2 * B * H3 * OUT_DIM + B * OUT_DIM,
        transcendentals=B * OUT_DIM,
        bytes_accessed=(H3 * OUT_DIM * 2          # bf16 W4 stream
                        + OUT_DIM * 4             # b4
                        + B * H3 * 2              # h3
                        + B * OUT_DIM * 4),       # output
    )

    flat = pl.pallas_call(
        output_layer_kernel,
        out_shape=jax.ShapeDtypeStruct((B, OUT_DIM), jnp.float32),
        grid_spec=pltpu.PrefetchScalarGridSpec(
            num_scalar_prefetch=0,
            grid=(n_tiles,),
            in_specs=[
                pl.BlockSpec((B, H3), lambda j: (0, 0)),      # h3 (tiny, reused)
                pl.BlockSpec((H3, TN), lambda j: (0, j)),     # bf16 W4 tile (6 MiB)
                pl.BlockSpec((1, TN), lambda j: (0, j)),      # bias tile
            ],
            out_specs=pl.BlockSpec((B, TN), lambda j: (0, j)),
        ),
        compiler_params=pltpu.CompilerParams(
            # no cross-step carry anymore -> let v7x's two TCs split the tiles
            dimension_semantics=("parallel",),
            # ~12 MiB double-buffered W4 + small tiles; leave v7x headroom
            vmem_limit_bytes=32 << 20,
        ),
        cost_estimate=cost,
    )(h3, w4_bf16, params["b4"])

    return flat.reshape(B, 3, IMAGE_SIZE, IMAGE_SIZE)


# ---------------------------------------------------------------------------
# Parameters & references
# ---------------------------------------------------------------------------
def init_params(key):
    """Deterministic synthetic parameters matching the module's shapes
    (PyTorch-style init: Embedding ~ N(0,1); Linear ~ U(+-1/sqrt(fan_in)))."""
    ks = jax.random.split(key, 9)

    def linear(kw, kb, fan_in, fan_out):
        bound = 1.0 / float(fan_in) ** 0.5
        w = jax.random.uniform(kw, (fan_in, fan_out), jnp.float32, -bound, bound)
        b = jax.random.uniform(kb, (1, fan_out), jnp.float32, -bound, bound)
        return w, b

    emb = jax.random.normal(ks[0], (NUM_CLASSES, LABEL_DIM), jnp.float32)
    w1, b1 = linear(ks[1], ks[2], IN_DIM, H1)
    w2, b2 = linear(ks[3], ks[4], H1, H2)
    w3, b3 = linear(ks[5], ks[6], H2, H3)
    w4, b4 = linear(ks[7], ks[8], H3, OUT_DIM)
    return dict(emb=emb, w1=w1, b1=b1, w2=w2, b2=b2, w3=w3, b3=b3, w4=w4, b4=b4)


def prepare_inference_params(params):
    """Store the streamed weight as bf16 once (outside the hot path)."""
    p = dict(params)
    p["w4"] = params["w4"].astype(jnp.bfloat16)
    return p


def reference_forward_f32(noise, labels, p):
    emb = jnp.take(p["emb"], labels, axis=0)
    x = jnp.concatenate([noise, emb], axis=-1)
    h = jnp.maximum(x @ p["w1"] + p["b1"], 0.0)
    h = jnp.maximum(h @ p["w2"] + p["b2"], 0.0)
    h = jnp.maximum(h @ p["w3"] + p["b3"], 0.0)
    out = jnp.tanh(h @ p["w4"] + p["b4"])
    return out.reshape(noise.shape[0], 3, IMAGE_SIZE, IMAGE_SIZE)


def reference_forward_bf16_matched(noise, labels, p):
    """Same quantization as the kernel (bf16 h3 / W4, f32 accumulate)."""
    emb = jnp.take(p["emb"], labels, axis=0)
    x = jnp.concatenate([noise, emb], axis=-1)
    h = jnp.maximum(x @ p["w1"] + p["b1"], 0.0)
    h = jnp.maximum(h @ p["w2"] + p["b2"], 0.0)
    h = jnp.maximum(h @ p["w3"] + p["b3"], 0.0)
    h_bf16 = h.astype(jnp.bfloat16)
    w4_bf16 = p["w4"].astype(jnp.bfloat16)
    out = jnp.tanh(
        jnp.dot(h_bf16, w4_bf16, preferred_element_type=jnp.float32) + p["b4"])
    return out.reshape(noise.shape[0], 3, IMAGE_SIZE, IMAGE_SIZE)


if __name__ == "__main__":
    key = jax.random.PRNGKey(0)
    k_params, k_noise, k_labels = jax.random.split(key, 3)

    B = 4
    params_f32 = init_params(k_params)
    params = prepare_inference_params(params_f32)
    noise = jax.random.normal(k_noise, (B, LATENT_DIM), jnp.float32)
    labels = jax.random.randint(k_labels, (B,), 0, NUM_CLASSES, jnp.int32)

    img = conditional_generator(noise, labels, params)
    img = jax.block_until_ready(img)

    assert img.shape == (B, 3, IMAGE_SIZE, IMAGE_SIZE), img.shape

    # Tight check against a reference with matching bf16 quantization.
    ref_match = jax.block_until_ready(
        reference_forward_bf16_matched(noise, labels, params_f32))
    assert jnp.allclose(img, ref_match, atol=1e-2), "mismatch vs bf16-matched ref"

    # Loose sanity check against the pure-f32 reference (bf16 weight rounding).
    ref_f32 = jax.block_until_ready(
        reference_forward_f32(noise, labels, params_f32))
    assert jnp.allclose(img, ref_f32, atol=1.5e-1), "mismatch vs f32 reference"

    print("KERNEL_OK")
</pallas_src>

<mosaic_0001>
module attributes {stable_mosaic.version = 11 : i64} {
  func.func @hidden_mlp_kernel(%arg0: memref<4x150xf32, #tpu.memory_space<vmem>>, %arg1: memref<150x256xf32, #tpu.memory_space<vmem>>, %arg2: memref<1x256xf32, #tpu.memory_space<vmem>>, %arg3: memref<256x512xf32, #tpu.memory_space<vmem>>, %arg4: memref<1x512xf32, #tpu.memory_space<vmem>>, %arg5: memref<512x1024xf32, #tpu.memory_space<vmem>>, %arg6: memref<1x1024xf32, #tpu.memory_space<vmem>>, %arg7: memref<4x1024xbf16, #tpu.memory_space<vmem>>) attributes {dimension_semantics = [], scalar_prefetch = 0 : i64, scratch_operands = 0 : i64, tpu.core_type = #tpu.core_type<tc>} {
    %c0 = arith.constant 0 : index
    %c0_0 = arith.constant 0 : index
    %0 = vector.load %arg0[%c0, %c0_0] : memref<4x150xf32, #tpu.memory_space<vmem>>, vector<4x150xf32>
    %c0_1 = arith.constant 0 : index
    %c0_2 = arith.constant 0 : index
    %1 = vector.load %arg1[%c0_1, %c0_2] : memref<150x256xf32, #tpu.memory_space<vmem>>, vector<150x256xf32>
    %cst = arith.constant dense<0.000000e+00> : vector<4x256xf32>
    %2 = tpu.matmul %0, %1, %cst {dimension_numbers = #tpu.dot_dimension_numbers<[1], [0], [0], [1], [0, 0, 1, 1], [], []>} : vector<4x150xf32>, vector<150x256xf32>, vector<4x256xf32> -> vector<4x256xf32>
    %c0_3 = arith.constant 0 : index
    %c0_4 = arith.constant 0 : index
    %3 = vector.load %arg2[%c0_3, %c0_4] : memref<1x256xf32, #tpu.memory_space<vmem>>, vector<1x256xf32>
    %4 = vector.broadcast %3 : vector<1x256xf32> to vector<4x256xf32>
    %5 = arith.addf %2, %4 : vector<4x256xf32>
    %cst_5 = arith.constant 0.000000e+00 : f32
    %6 = vector.broadcast %cst_5 : f32 to vector<4x256xf32>
    %7 = arith.maximumf %5, %6 : vector<4x256xf32>
    %c0_6 = arith.constant 0 : index
    %c0_7 = arith.constant 0 : index
    %8 = vector.load %arg3[%c0_6, %c0_7] : memref<256x512xf32, #tpu.memory_space<vmem>>, vector<256x512xf32>
    %cst_8 = arith.constant dense<0.000000e+00> : vector<4x512xf32>
    %9 = tpu.matmul %7, %8, %cst_8 {dimension_numbers = #tpu.dot_dimension_numbers<[1], [0], [0], [1], [0, 0, 1, 1], [], []>} : vector<4x256xf32>, vector<256x512xf32>, vector<4x512xf32> -> vector<4x512xf32>
    %c0_9 = arith.constant 0 : index
    %c0_10 = arith.constant 0 : index
    %10 = vector.load %arg4[%c0_9, %c0_10] : memref<1x512xf32, #tpu.memory_space<vmem>>, vector<1x512xf32>
    %11 = vector.broadcast %10 : vector<1x512xf32> to vector<4x512xf32>
    %12 = arith.addf %9, %11 : vector<4x512xf32>
    %cst_11 = arith.constant 0.000000e+00 : f32
    %13 = vector.broadcast %cst_11 : f32 to vector<4x512xf32>
    %14 = arith.maximumf %12, %13 : vector<4x512xf32>
    %c0_12 = arith.constant 0 : index
    %c0_13 = arith.constant 0 : index
    %15 = vector.load %arg5[%c0_12, %c0_13] : memref<512x1024xf32, #tpu.memory_space<vmem>>, vector<512x1024xf32>
    %cst_14 = arith.constant dense<0.000000e+00> : vector<4x1024xf32>
    %16 = tpu.matmul %14, %15, %cst_14 {dimension_numbers = #tpu.dot_dimension_numbers<[1], [0], [0], [1], [0, 0, 1, 1], [], []>} : vector<4x512xf32>, vector<512x1024xf32>, vector<4x1024xf32> -> vector<4x1024xf32>
    %c0_15 = arith.constant 0 : index
    %c0_16 = arith.constant 0 : index
    %17 = vector.load %arg6[%c0_15, %c0_16] : memref<1x1024xf32, #tpu.memory_space<vmem>>, vector<1x1024xf32>
    %18 = vector.broadcast %17 : vector<1x1024xf32> to vector<4x1024xf32>
    %19 = arith.addf %16, %18 : vector<4x1024xf32>
    %cst_17 = arith.constant 0.000000e+00 : f32
    %20 = vector.broadcast %cst_17 : f32 to vector<4x1024xf32>
    %21 = arith.maximumf %19, %20 : vector<4x1024xf32>
    %22 = arith.truncf %21 : vector<4x1024xf32> to vector<4x1024xbf16>
    %c0_18 = arith.constant 0 : index
    %c0_19 = arith.constant 0 : index
    %23 = vector.load %arg7[%c0_18, %c0_19] : memref<4x1024xbf16, #tpu.memory_space<vmem>>, vector<4x1024xbf16>
    tpu.vector_store %arg7[%c0_18, %c0_19], %22 {strides = array<i32>} : memref<4x1024xbf16, #tpu.memory_space<vmem>>, vector<4x1024xbf16>,
    return
  }
}

</mosaic_0001>

<bundles_post_ra>
// kernel: tpu_custom_call.1
= control target key start
LH: loop header
LB: loop body
LE: loop exit
PB: predicated region body
PF: predicated region fallthrough
CT: control target
= control target key end

     0   :  { %12 = vsyncpa [#allocation3], 0  ;;  %s2869_s0 = inlined_call_operand.hbm [shape: f32[4,150], index: 0, kind: input, shape index: {}]   ;;  %s2870_s1 = inlined_call_operand.hbm [shape: f32[150,256], index: 1, kind: input, shape index: {}]   ;;  %s2871_s2 = inlined_call_operand.hbm [shape: f32[1,256], index: 2, kind: input, shape index: {}]   ;;  %s2872_s3 = inlined_call_operand.hbm [shape: f32[256,512], index: 3, kind: input, shape index: {}]   ;;  %s2873_s4 = inlined_call_operand.hbm [shape: f32[1,512], index: 4, kind: input, shape index: {}]   ;;  %s2874_s5 = inlined_call_operand.hbm [shape: f32[512,1024], index: 5, kind: input, shape index: {}]   ;;  %s2875_s6 = inlined_call_operand.hbm [shape: f32[1,1024], index: 6, kind: input, shape index: {}]   ;;  %s2876_s7 = inlined_call_operand.hbm [shape: bf16[4,1024], index: 7, kind: output, shape index: {}]  }
   0x1   :  { %13 = vsyncpa [#allocation6], 0 }
   0x2   :  { %14 = vsyncpa [#allocation9], 0 }
   0x3   :  { %15 = vsyncpa [#allocation12], 0 }
   0x4   :  { %16 = vsyncpa [#allocation4], 0  ;;  %s2649_s24 = smov [#allocation5]   ;;  %s2463_s28 = scalar_lea.hbm %s2870_s1, 4864 }
   0x5   :  { %s32_s25 = sshll.u32 %s2649_s24, 4  ;;  %p2464_p0 = scmp.ne.s32.totalorder %s2870_s1, %s2463_s28  ;;  %s33_s25 = int_to_ptr.vmem [resolvable:$true] %s32_s25 }
   0x6   :  { %p2467_p1 = scmp.lt.u32.totalorder %s2463_s28, %s2870_s1 }
   0x8   :  { %p2469_p2 = pnand %p2467_p1, %p2464_p0 }
   0xa   :  { %2472 = shalt.err (!%p2469_p2)
}
   0xb   :  { %s2473_s10 = scalar_lea.vmem %s33_s25, 4864  ;;  %p2478_p4 = scmp.lt.s32.totalorder %s33_s25, %s33_s25 }
   0xc   :  { %p2474_p3 = scmp.ne.s32.totalorder %s33_s25, %s2473_s10  ;;  %p2479_p5 = scmp.lt.s32.totalorder %s2473_s10, %s2473_s10 }
   0xe   :  { %p2480_p6 = por %p2479_p5, %p2478_p4 }
  0x10   :  { %p2481_p7 = pnand %p2480_p6, %p2474_p3 }
  0x12   :  { %2484 = shalt.err (!%p2481_p7)
}
  0x13   :  { %s2650_s11 = smov 256   ;;  %s2651_s12 = smov 16  }
  0x14   :  { %38 = dma.hbm_to_vmem [thread:$0]  %s2870_s1, 4864, %s33_s25, [#allocation6], %s2650_s11, %s2650_s11, %s2651_s12  }
  0x15   :  { %s2652_s15 = smov [#allocation8]   ;;  %s2485_s19 = scalar_lea.hbm %s2872_s3, 16384 }
  0x16   :  { %s54_s16 = sshll.u32 %s2652_s15, 4  ;;  %p2486_p8 = scmp.ne.s32.totalorder %s2872_s3, %s2485_s19  ;;  %s55_s16 = int_to_ptr.vmem [resolvable:$true] %s54_s16 }
  0x17   :  { %p2489_p9 = scmp.lt.u32.totalorder %s2485_s19, %s2872_s3 }
  0x19   :  { %p2491_p10 = pnand %p2489_p9, %p2486_p8 }
  0x1b   :  { %2494 = shalt.err (!%p2491_p10)
}
  0x1c   :  { %s2495_s24 = scalar_lea.vmem %s55_s16, 16384  ;;  %p2500_p12 = scmp.lt.s32.totalorder %s55_s16, %s55_s16 }
  0x1d   :  { %p2496_p11 = scmp.ne.s32.totalorder %s55_s16, %s2495_s24  ;;  %p2501_p13 = scmp.lt.s32.totalorder %s2495_s24, %s2495_s24 }
  0x1f   :  { %p2502_p0 = por %p2501_p13, %p2500_p12 }
  0x21   :  { %p2503_p1 = pnand %p2502_p0, %p2496_p11 }
  0x23   :  { %2506 = shalt.err (!%p2503_p1)
}
  0x24   :  { %s2653_s1 = smov 512   ;;  %s2654_s25 = smov 32  }
  0x25   :  { %60 = dma.hbm_to_vmem [thread:$0]  %s2872_s3, 16384, %s55_s16, [#allocation9], %s2653_s1, %s2653_s1, %s2654_s25  }
  0x26   :  { %s2655_s28 = smov [#allocation11]   ;;  %s2507_s9 = scalar_lea.hbm %s2874_s5, 65536 }
  0x27   :  { %s76_s29 = sshll.u32 %s2655_s28, 4  ;;  %p2508_p2 = scmp.ne.s32.totalorder %s2874_s5, %s2507_s9  ;;  %s77_s29 = int_to_ptr.vmem [resolvable:$true] %s76_s29 }
  0x28   :  { %p2511_p3 = scmp.lt.u32.totalorder %s2507_s9, %s2874_s5 }
  0x2a   :  { %p2513_p4 = pnand %p2511_p3, %p2508_p2 }
  0x2c   :  { %2516 = shalt.err (!%p2513_p4)
}
  0x2d   :  { %s2517_s14 = scalar_lea.vmem %s77_s29, 65536  ;;  %p2522_p6 = scmp.lt.s32.totalorder %s77_s29, %s77_s29 }
  0x2e   :  { %p2518_p5 = scmp.ne.s32.totalorder %s77_s29, %s2517_s14  ;;  %p2523_p7 = scmp.lt.s32.totalorder %s2517_s14, %s2517_s14 }
  0x30   :  { %p2524_p8 = por %p2523_p7, %p2522_p6 }
  0x32   :  { %p2525_p9 = pnand %p2524_p8, %p2518_p5 }
  0x34   :  { %2528 = shalt.err (!%p2525_p9)
}
  0x35   :  { %s2656_s3 = smov 1024   ;;  %s2657_s15 = smov 64  }
  0x36   :  { %82 = dma.hbm_to_vmem [thread:$0]  %s2874_s5, 65536, %s77_s29, [#allocation12], %s2656_s3, %s2656_s3, %s2657_s15  }
  0x37   :  { %s2658_s18 = smov [#allocation2]   ;;  %s2659_s20 = smov [#allocation7]  }
  0x38   :  { %s23_s19 = sshll.u32 %s2658_s18, 4  ;;  %s45_s21 = sshll.u32 %s2659_s20, 4  ;;  %s24_s19 = int_to_ptr.vmem [resolvable:$true] %s23_s19  ;;  %s46_s21 = int_to_ptr.vmem [resolvable:$true] %s45_s21 }
  0x39   :  { %s2529_s24 = scalar_lea.hbm %s2869_s0, 128 }
  0x3a   :  { %p2530_p10 = scmp.ne.s32.totalorder %s2869_s0, %s2529_s24  ;;  %p2533_p11 = scmp.lt.u32.totalorder %s2529_s24, %s2869_s0 }
  0x3c   :  { %p2535_p12 = pnand %p2533_p11, %p2530_p10 }
  0x3e   :  { %2538 = shalt.err (!%p2535_p12)
}
  0x3f   :  { %s2539_s5 = scalar_lea.vmem %s24_s19, 128  ;;  %p2544_p0 = scmp.lt.s32.totalorder %s24_s19, %s24_s19 }
  0x40   :  { %p2540_p13 = scmp.ne.s32.totalorder %s24_s19, %s2539_s5  ;;  %p2545_p1 = scmp.lt.s32.totalorder %s2539_s5, %s2539_s5 }
  0x42   :  { %p2546_p2 = por %p2545_p1, %p2544_p0 }
  0x44   :  { %p2547_p3 = pnand %p2546_p2, %p2540_p13 }
  0x46   :  { %2550 = shalt.err (!%p2547_p3)
}
  0x47   :  { %26 = dma.hbm_to_vmem [thread:$0]  %s2869_s0, 128, %s24_s19, [#allocation3]  }
  0x48   :  { %s2551_s9 = scalar_lea.hbm %s2871_s2, 32 }
  0x49   :  { %p2552_p4 = scmp.ne.s32.totalorder %s2871_s2, %s2551_s9  ;;  %p2555_p5 = scmp.lt.u32.totalorder %s2551_s9, %s2871_s2 }
  0x4b   :  { %p2557_p6 = pnand %p2555_p5, %p2552_p4 }
  0x4d   :  { %2560 = shalt.err (!%p2557_p6)
}
  0x4e   :  { %s2561_s14 = scalar_lea.vmem %s46_s21, 32  ;;  %p2566_p8 = scmp.lt.s32.totalorder %s46_s21, %s46_s21 }
  0x4f   :  { %p2562_p7 = scmp.ne.s32.totalorder %s46_s21, %s2561_s14  ;;  %p2567_p9 = scmp.lt.s32.totalorder %s2561_s14, %s2561_s14 }
  0x51   :  { %p2568_p10 = por %p2567_p9, %p2566_p8 }
  0x53   :  { %p2569_p11 = pnand %p2568_p10, %p2562_p7 }
  0x55   :  { %2572 = shalt.err (!%p2569_p11)
}
  0x56   :  { %48 = dma.hbm_to_vmem [thread:$0]  %s2871_s2, 32, %s46_s21, [#allocation6]  }
  0x57   :  { %s2660_s15 = smov [#allocation10]   ;;  %s2661_s17 = smov [#allocation13]  }
  0x58   :  { %s67_s16 = sshll.u32 %s2660_s15, 4  ;;  %s89_s18 = sshll.u32 %s2661_s17, 4  ;;  %s68_s16 = int_to_ptr.vmem [resolvable:$true] %s67_s16  ;;  %s90_s18 = int_to_ptr.vmem [resolvable:$true] %s89_s18 }
  0x59   :  { %s2573_s22 = scalar_lea.hbm %s2873_s4, 64 }
  0x5a   :  { %p2574_p12 = scmp.ne.s32.totalorder %s2873_s4, %s2573_s22  ;;  %p2577_p13 = scmp.lt.u32.totalorder %s2573_s22, %s2873_s4 }
  0x5c   :  { %p2579_p0 = pnand %p2577_p13, %p2574_p12 }
  0x5e   :  { %2582 = shalt.err (!%p2579_p0)
}
  0x5f   :  { %s2583_s2 = scalar_lea.vmem %s68_s16, 64  ;;  %p2588_p2 = scmp.lt.s32.totalorder %s68_s16, %s68_s16 }
  0x60   :  { %p2584_p1 = scmp.ne.s32.totalorder %s68_s16, %s2583_s2  ;;  %p2589_p3 = scmp.lt.s32.totalorder %s2583_s2, %s2583_s2 }
  0x62   :  { %p2590_p4 = por %p2589_p3, %p2588_p2 }
  0x64   :  { %p2591_p5 = pnand %p2590_p4, %p2584_p1 }
  0x66   :  { %2594 = shalt.err (!%p2591_p5)
}
  0x67   :  { %70 = dma.hbm_to_vmem [thread:$0]  %s2873_s4, 64, %s68_s16, [#allocation9]  }
  0x68   :  { %s2595_s28 = scalar_lea.hbm %s2875_s6, 128 }
  0x69   :  { %p2596_p6 = scmp.ne.s32.totalorder %s2875_s6, %s2595_s28  ;;  %p2599_p7 = scmp.lt.u32.totalorder %s2595_s28, %s2875_s6 }
  0x6b   :  { %p2601_p8 = pnand %p2599_p7, %p2596_p6 }
  0x6d   :  { %2604 = shalt.err (!%p2601_p8)
}
  0x6e   :  { %s2605_s10 = scalar_lea.vmem %s90_s18, 128  ;;  %p2610_p10 = scmp.lt.s32.totalorder %s90_s18, %s90_s18 }
  0x6f   :  { %p2606_p9 = scmp.ne.s32.totalorder %s90_s18, %s2605_s10  ;;  %p2611_p11 = scmp.lt.s32.totalorder %s2605_s10, %s2605_s10 }
  0x71   :  { %p2612_p12 = por %p2611_p11, %p2610_p10 }
  0x73   :  { %p2613_p13 = pnand %p2612_p12, %p2606_p9 }
  0x75   :  { %2616 = shalt.err (!%p2613_p13)
}
  0x76   :  { %92 = dma.hbm_to_vmem [thread:$0]  %s2875_s6, 128, %s90_s18, [#allocation12]  }
  0x77   :  { %2639 = dma.done.wait [#allocation3], 128  }
  0x78   :  { %2640 = vsyncadd [#allocation3], 4294967168 }
  0x79   :  { %2641 = dma.done.wait [#allocation6], 4896  }
  0x7a   :  { %2642 = vsyncadd [#allocation6], 4294962400 }
  0x7b   :  { %2643 = dma.done.wait [#allocation9], 16448  }
  0x7c   :  { %2644 = vsyncadd [#allocation9], 4294950848 }
  0x7d   :  { %2645 = dma.done.wait [#allocation12], 65664  }
  0x7e   :  { %2646 = vsyncadd [#allocation12], 4294901632  ;;  %v116_v0 = vld [vmem:[#allocation5 + $0x8] sm:$0xff]  ;;  %v118_v1 = vld [vmem:[#allocation5 + $0x18] sm:$0xff]  ;;  %vm167_vm0 = vcmask 179200   ;;  %vm170_vm1 = vcmask 1045504  }
  0x7f   :  { %v115_v2 = vld [vmem:[#allocation5] sm:$0xff]  ;;  %v1755_v3 = vpack.c.bf16 %v118_v1, %v116_v0  ;;  %v117_v4 = vld [vmem:[#allocation5 + $0x10] sm:$0xff]  ;;  %v120_v5 = vld [vmem:[#allocation5 + $0x28] sm:$0xff]  ;;  %s2663_s6 = smov [#allocation14]  }
  0x80   :  { %v122_v6 = vld [vmem:[#allocation5 + $0x38] sm:$0xff]  ;;  %v1757_v7 = vpack.c.bf16 %v117_v4, %v115_v2  ;;  %v119_v9 = vld [vmem:[#allocation5 + $0x20] sm:$0xff]  ;;  %v121_v10 = vld [vmem:[#allocation5 + $0x30] sm:$0xff]  ;;  %s1736_s12 = sshll.u32 %s2663_s6, 4  ;;  %s1737_s12 = int_to_ptr.vmem [resolvable:$true] %s1736_s12 }
  0x81   :  { %v1759_v8 = vpack.c.bf16 %v122_v6, %v120_v5  ;;  %v124_v11 = vld [vmem:[#allocation5 + $0x48] sm:$0xff]  ;;  %1756 = vmatprep.subr.bf16.mxu0 %v1755_v3  ;;  %v126_v12 = vld [vmem:[#allocation5 + $0x58] sm:$0xff]  ;;  %v1761_v13 = vpack.c.bf16 %v121_v10, %v119_v9  ;;  %v123_v15 = vld [vmem:[#allocation5 + $0x40] sm:$0xff]  ;;  %s2617_s13 = scalar_lea.vmem %s1737_s12, 256  ;;  %p2622_p1 = scmp.lt.s32.totalorder %s1737_s12, %s1737_s12 }
  0x82   :  { %1758 = vmatpush1.bf16.msra.mxu0 %v1757_v7  ;;  %v1763_v14 = vpack.c.bf16 %v126_v12, %v124_v11  ;;  %v125_v16 = vld [vmem:[#allocation5 + $0x50] sm:$0xff]  ;;  %v128_v17 = vld [vmem:[#allocation5 + $0x68] sm:$0xff]  ;;  %v130_v18 = vld [vmem:[#allocation5 + $0x78] sm:$0xff]  ;;  %p2618_p0 = scmp.ne.s32.totalorder %s1737_s12, %s2617_s13  ;;  %p2623_p2 = scmp.lt.s32.totalorder %s2617_s13, %s2617_s13 }
  0x83   :  { %1760 = vmatprep.subr.bf16.mxu0 %v1759_v8  ;;  %v1765_v19 = vpack.c.bf16 %v125_v16, %v123_v15  ;;  %v1767_v20 = vpack.c.bf16 %v130_v18, %v128_v17  ;;  %v127_v21 = vld [vmem:[#allocation5 + $0x60] sm:$0xff]  ;;  %v129_v22 = vld [vmem:[#allocation5 + $0x70] sm:$0xff]  ;;  %v132_v23 = vld [vmem:[#allocation5 + $0x88] sm:$0xff] }
  0x84   :  { %v134_v24 = vld [vmem:[#allocation5 + $0x98] sm:$0xff]  ;;  %v1769_v25 = vpack.c.bf16 %v129_v22, %v127_v21  ;;  %v131_v26 = vld [vmem:[#allocation5 + $0x80] sm:$0xff]  ;;  %v133_v27 = vld [vmem:[#allocation5 + $0x90] sm:$0xff]  ;;  %p2624_p3 = por %p2623_p2, %p2622_p1 }
  0x85   :  { %v2788_v28 = vld [vmem:[#allocation2] sm:$0xff]  ;;  %v1771_v29 = vpack.c.bf16 %v134_v24, %v132_v23  ;;  %v136_v30 = vld [vmem:[#allocation5 + $0xa8] sm:$0xff]  ;;  %v1773_v40 = vpack.c.bf16 %v133_v27, %v131_v26  ;;  %v135_v41 = vld [vmem:[#allocation5 + $0xa0] sm:$0xff] }
  0x86   :  { %1762 = vmatpush1.bf16.msra.mxu0 %v1761_v13  ;;  %v166_v31 = vcombine.high %v2788_v28, %v2788_v28  ;;  %v251_v32 = vld [vmem:[#allocation8 + $0x8] sm:$0xff]  ;;  %v250_v36 = vld [vmem:[#allocation8] sm:$0xff]  ;;  %v140_v45 = vld [vmem:[#allocation5 + $0xc8] sm:$0xff]  ;;  %p2625_p4 = pnand %p2624_p3, %p2618_p0 }
  0x87   :  { %1764 = vmatprep.subr.bf16.mxu0 %v1763_v14  ;;  %v255_v33 = vld [vmem:[#allocation8 + $0x28] sm:$0xff]  ;;  %v254_v37 = vld [vmem:[#allocation8 + $0x20] sm:$0xff]  ;;  %v144_v60 = vld [vmem:[#allocation5 + $0xe8] sm:$0xff] }
  0x88   :  { %v138_v34 = vld [vmem:[#allocation5 + $0xb8] sm:$0xff]  ;;  %v1791_v35 = vpack.c.bf16 %v255_v33, %v251_v32  ;;  %1750 = vmatprep.mubr.msk.f32.mxu0 %vm167_vm0, %v166_v31  ;;  %v1793_v38 = vpack.c.bf16 %v254_v37, %v250_v36  ;;  %v137_v42 = vld [vmem:[#allocation5 + $0xb0] sm:$0xff]  ;;  %v139_v56 = vld [vmem:[#allocation5 + $0xc0] sm:$0xff] }
  0x89   :  { %v259_v39 = vld [vmem:[#allocation8 + $0x48] sm:$0xff]  ;;  %v1775_v44 = vpack.c.bf16 %v138_v34, %v136_v30  ;;  %v258_v47 = vld [vmem:[#allocation8 + $0x40] sm:$0xff]  ;;  %v1777_v55 = vpack.c.bf16 %v137_v42, %v135_v41  ;;  %v148_v10 = vld [vmem:[#allocation5 + $0x108] sm:$0xff] }
  0x8a   :  { %1766 = vmatpush1.bf16.msra.mxu0 %v1765_v19  ;;  %1792 = vmatprep.subr.bf16.mxu1 %v1791_v35  ;;  %v263_v43 = vld [vmem:[#allocation8 + $0x68] sm:$0xff]  ;;  %v262_v48 = vld [vmem:[#allocation8 + $0x60] sm:$0xff]  ;;  %v152_v30 = vld [vmem:[#allocation5 + $0x128] sm:$0x3f] }
  0x8b   :  { %1768 = vmatprep.subr.bf16.mxu0 %v1767_v20  ;;  %1794 = vmatpush1.bf16.msra.mxu1 %v1793_v38  ;;  %v1795_v46 = vpack.c.bf16 %v263_v43, %v259_v39  ;;  %v142_v49 = vld [vmem:[#allocation5 + $0xd8] sm:$0xff]  ;;  %v1797_v50 = vpack.c.bf16 %v262_v48, %v258_v47  ;;  %v141_v57 = vld [vmem:[#allocation5 + $0xd0] sm:$0xff]  ;;  %v143_v8 = vld [vmem:[#allocation5 + $0xe0] sm:$0xff] }
  0x8c   :  { %v267_v51 = vld [vmem:[#allocation8 + $0x88] sm:$0xff]  ;;  %v266_v54 = vld [vmem:[#allocation8 + $0x80] sm:$0xff]  ;;  %v1779_v59 = vpack.c.bf16 %v142_v49, %v140_v45  ;;  %v1781_v5 = vpack.c.bf16 %v141_v57, %v139_v56  ;;  %v253_v31 = vld [vmem:[#allocation8 + $0x18] sm:$0xff] }
  0x8d   :  { %v271_v52 = vld [vmem:[#allocation8 + $0xa8] sm:$0xff]  ;;  %1796 = vmatprep.subr.bf16.mxu1 %v1795_v46  ;;  %v270_v58 = vld [vmem:[#allocation8 + $0xa0] sm:$0xff]  ;;  %v257_v33 = vld [vmem:[#allocation8 + $0x38] sm:$0xff] }
  0x8e   :  { %1770 = vmatpush1.bf16.msra.mxu0 %v1769_v25  ;;  %v1799_v53 = vpack.c.bf16 %v271_v52, %v267_v51  ;;  %v1801_v61 = vpack.c.bf16 %v270_v58, %v266_v54  ;;  %v275_v62 = vld [vmem:[#allocation8 + $0xc8] sm:$0xff]  ;;  %v274_v2 = vld [vmem:[#allocation8 + $0xc0] sm:$0xff]  ;;  %v252_v34 = vld [vmem:[#allocation8 + $0x10] sm:$0xff] }
  0x8f   :  { %1772 = vmatprep.subr.bf16.mxu0 %v1771_v29  ;;  %1798 = vmatpush1.bf16.msra.mxu1 %v1797_v50  ;;  %v279_v63 = vld [vmem:[#allocation8 + $0xe8] sm:$0xff]  ;;  %v278_v3 = vld [vmem:[#allocation8 + $0xe0] sm:$0xff]  ;;  %v256_v35 = vld [vmem:[#allocation8 + $0x30] sm:$0xff] }
  0x90   :  { %v146_v0 = vld [vmem:[#allocation5 + $0xf8] sm:$0xff]  ;;  %1800 = vmatprep.subr.bf16.mxu1 %v1799_v53  ;;  %v1803_v1 = vpack.c.bf16 %v279_v63, %v275_v62  ;;  %v145_v9 = vld [vmem:[#allocation5 + $0xf0] sm:$0xff]  ;;  %v1805_v11 = vpack.c.bf16 %v278_v3, %v274_v2  ;;  %v147_v20 = vld [vmem:[#allocation5 + $0x100] sm:$0xff]  ;;  %v1857_v45 = vpack.c.bf16 %v256_v35, %v252_v34 }
  0x91   :  { %v283_v4 = vld [vmem:[#allocation8 + $0x108] sm:$0xff]  ;;  %v1783_v7 = vpack.c.bf16 %v146_v0, %v144_v60  ;;  %v282_v14 = vld [vmem:[#allocation8 + $0x100] sm:$0xff]  ;;  %v1785_v18 = vpack.c.bf16 %v145_v9, %v143_v8  ;;  %v261_v37 = vld [vmem:[#allocation8 + $0x58] sm:$0xff] }
  0x92   :  { %1774 = vmatpush1.bf16.msra.mxu0 %v1773_v40  ;;  %v287_v6 = vld [vmem:[#allocation8 + $0x128] sm:$0xff]  ;;  %v286_v15 = vld [vmem:[#allocation8 + $0x120] sm:$0xff]  ;;  %v265_v40 = vld [vmem:[#allocation8 + $0x78] sm:$0xff] }
  0x93   :  { %1776 = vmatprep.subr.bf16.mxu0 %v1775_v44  ;;  %1802 = vmatpush1.bf16.msra.mxu1 %v1801_v61  ;;  %v150_v12 = vld [vmem:[#allocation5 + $0x118] sm:$0xff]  ;;  %v1807_v13 = vpack.c.bf16 %v287_v6, %v283_v4  ;;  %v149_v21 = vld [vmem:[#allocation5 + $0x110] sm:$0xff]  ;;  %v1809_v22 = vpack.c.bf16 %v286_v15, %v282_v14  ;;  %v151_v43 = vld [vmem:[#allocation5 + $0x120] sm:$0x3f]  ;;  %v1855_v44 = vpack.c.bf16 %v257_v33, %v253_v31 }
  0x94   :  { %1804 = vmatprep.subr.bf16.mxu1 %v1803_v1  ;;  %v291_v16 = vld [vmem:[#allocation8 + $0x148] sm:$0xff]  ;;  %v1787_v19 = vpack.c.bf16 %v150_v12, %v148_v10  ;;  %v290_v24 = vld [vmem:[#allocation8 + $0x140] sm:$0xff]  ;;  %v1789_v29 = vpack.c.bf16 %v149_v21, %v147_v20  ;;  %v260_v46 = vld [vmem:[#allocation8 + $0x50] sm:$0xff]  ;;  %v1859_v49 = vpack.c.bf16 %v265_v40, %v261_v37 }
  0x95   :  { %v295_v17 = vld [vmem:[#allocation8 + $0x168] sm:$0xff]  ;;  %v294_v25 = vld [vmem:[#allocation8 + $0x160] sm:$0xff]  ;;  %v264_v47 = vld [vmem:[#allocation8 + $0x70] sm:$0xff] }
  0x96   :  { %1778 = vmatpush1.bf16.msra.mxu0 %v1777_v55  ;;  %v1811_v23 = vpack.c.bf16 %v295_v17, %v291_v16  ;;  %v299_v26 = vld [vmem:[#allocation8 + $0x188] sm:$0xff]  ;;  %v1813_v32 = vpack.c.bf16 %v294_v25, %v290_v24  ;;  %v298_v38 = vld [vmem:[#allocation8 + $0x180] sm:$0xff]  ;;  %v269_v50 = vld [vmem:[#allocation8 + $0x98] sm:$0xff]  ;;  %v1861_v57 = vpack.c.bf16 %v264_v47, %v260_v46 }
  0x97   :  { %1780 = vmatprep.subr.bf16.mxu0 %v1779_v59  ;;  %1806 = vmatpush1.bf16.msra.mxu1 %v1805_v11  ;;  %v303_v27 = vld [vmem:[#allocation8 + $0x1a8] sm:$0xff]  ;;  %v302_v39 = vld [vmem:[#allocation8 + $0x1a0] sm:$0xff]  ;;  %v273_v54 = vld [vmem:[#allocation8 + $0xb8] sm:$0xff] }
  0x98   :  { %1808 = vmatprep.subr.bf16.mxu1 %v1807_v13  ;;  %v1815_v36 = vpack.c.bf16 %v303_v27, %v299_v26  ;;  %v307_v41 = vld [vmem:[#allocation8 + $0x1c8] sm:$0xff]  ;;  %v1817_v48 = vpack.c.bf16 %v302_v39, %v298_v38  ;;  %v306_v52 = vld [vmem:[#allocation8 + $0x1c0] sm:$0xff]  ;;  %v268_v58 = vld [vmem:[#allocation8 + $0x90] sm:$0xff]  ;;  %v1863_v61 = vpack.c.bf16 %v273_v54, %v269_v50 }
  0x99   :  { %v311_v42 = vld [vmem:[#allocation8 + $0x1e8] sm:$0xff]  ;;  %v310_v53 = vld [vmem:[#allocation8 + $0x1e0] sm:$0xff]  ;;  %v272_v59 = vld [vmem:[#allocation8 + $0xb0] sm:$0xff] }
  0x9a   :  { %1782 = vmatpush1.bf16.msra.mxu0 %v1781_v5  ;;  %v1819_v51 = vpack.c.bf16 %v311_v42, %v307_v41  ;;  %v315_v55 = vld [vmem:[#allocation8 + $0x208] sm:$0xff]  ;;  %v1821_v60 = vpack.c.bf16 %v310_v53, %v306_v52  ;;  %v277_v62 = vld [vmem:[#allocation8 + $0xd8] sm:$0xff]  ;;  %v314_v0 = vld [vmem:[#allocation8 + $0x200] sm:$0xff]  ;;  %v1865_v5 = vpack.c.bf16 %v272_v59, %v268_v58 }
  0x9b   :  { %1784 = vmatprep.subr.bf16.mxu0 %v1783_v7  ;;  %1810 = vmatpush1.bf16.msra.mxu1 %v1809_v22  ;;  %v319_v56 = vld [vmem:[#allocation8 + $0x228] sm:$0xff]  ;;  %v318_v1 = vld [vmem:[#allocation8 + $0x220] sm:$0xff]  ;;  %v281_v2 = vld [vmem:[#allocation8 + $0xf8] sm:$0xff] }
  0x9c   :  { %1812 = vmatprep.subr.bf16.mxu1 %v1811_v23  ;;  %v1823_v63 = vpack.c.bf16 %v319_v56, %v315_v55  ;;  %v323_v3 = vld [vmem:[#allocation8 + $0x248] sm:$0xff]  ;;  %v280_v6 = vld [vmem:[#allocation8 + $0xf0] sm:$0xff]  ;;  %v1825_v7 = vpack.c.bf16 %v318_v1, %v314_v0  ;;  %v1867_v8 = vpack.c.bf16 %v281_v2, %v277_v62  ;;  %v285_v9 = vld [vmem:[#allocation8 + $0x118] sm:$0xff] }
  0x9d   :  { %v327_v4 = vld [vmem:[#allocation8 + $0x268] sm:$0xff]  ;;  %v322_v11 = vld [vmem:[#allocation8 + $0x240] sm:$0xff]  ;;  %v289_v13 = vld [vmem:[#allocation8 + $0x138] sm:$0xff] }
  0x9e   :  { %1786 = vmatpush1.bf16.msra.mxu0 %v1785_v18  ;;  %v1827_v10 = vpack.c.bf16 %v327_v4, %v323_v3  ;;  %v326_v12 = vld [vmem:[#allocation8 + $0x260] sm:$0xff]  ;;  %v331_v14 = vld [vmem:[#allocation8 + $0x288] sm:$0xff]  ;;  %v284_v17 = vld [vmem:[#allocation8 + $0x110] sm:$0xff]  ;;  %v1871_v20 = vpack.c.bf16 %v289_v13, %v285_v9 }
  0x9f   :  { %1788 = vmatprep.subr.bf16.mxu0 %v1787_v19  ;;  %1814 = vmatpush1.bf16.msra.mxu1 %v1813_v32  ;;  %v335_v15 = vld [vmem:[#allocation8 + $0x2a8] sm:$0xff]  ;;  %v288_v18 = vld [vmem:[#allocation8 + $0x130] sm:$0xff]  ;;  %v1829_v19 = vpack.c.bf16 %v326_v12, %v322_v11  ;;  %v293_v21 = vld [vmem:[#allocation8 + $0x158] sm:$0xff] }
  0xa0   :  { %1816 = vmatprep.subr.bf16.mxu1 %v1815_v36  ;;  %v1831_v22 = vpack.c.bf16 %v335_v15, %v331_v14  ;;  %v330_v23 = vld [vmem:[#allocation8 + $0x280] sm:$0xff]  ;;  %v297_v25 = vld [vmem:[#allocation8 + $0x178] sm:$0xff]  ;;  %v339_v26 = vld [vmem:[#allocation8 + $0x2c8] sm:$0xff] }
  0xa1   :  { %v334_v24 = vld [vmem:[#allocation8 + $0x2a0] sm:$0xff]  ;;  %v343_v27 = vld [vmem:[#allocation8 + $0x2e8] sm:$0xff]  ;;  %v296_v31 = vld [vmem:[#allocation8 + $0x170] sm:$0xff]  ;;  %v1875_v33 = vpack.c.bf16 %v297_v25, %v293_v21 }
  0xa2   :  { %1790 = vmatpush1.bf16.msra.mxu0 %v1789_v29  ;;  %v1873_v29 = vpack.c.bf16 %v288_v18, %v284_v17  ;;  %v1833_v32 = vpack.c.bf16 %v334_v24, %v330_v23  ;;  %v301_v34 = vld [vmem:[#allocation8 + $0x198] sm:$0xff]  ;;  %v1835_v35 = vpack.c.bf16 %v343_v27, %v339_v26  ;;  %v338_v36 = vld [vmem:[#allocation8 + $0x2c0] sm:$0xff]  ;;  %v347_v39 = vld [vmem:[#allocation8 + $0x308] sm:$0xff] }
  0xa3   :  { %1748 = vmatprep.subr.msk.mxu0 %vm170_vm1, %v152_v30  ;;  %1818 = vmatpush1.bf16.msra.mxu1 %v1817_v48  ;;  %v292_v30 = vld [vmem:[#allocation8 + $0x150] sm:$0xff]  ;;  %v342_v37 = vld [vmem:[#allocation8 + $0x2e0] sm:$0xff]  ;;  %v305_v38 = vld [vmem:[#allocation8 + $0x1b8] sm:$0xff] }
  0xa4   :  { %1820 = vmatprep.subr.bf16.mxu1 %v1819_v51  ;;  %v351_v40 = vld [vmem:[#allocation8 + $0x328] sm:$0xff]  ;;  %v1877_v41 = vpack.c.bf16 %v296_v31, %v292_v30  ;;  %v300_v42 = vld [vmem:[#allocation8 + $0x190] sm:$0xff]  ;;  %v309_v46 = vld [vmem:[#allocation8 + $0x1d8] sm:$0xff] }
  0xa5   :  { %v1839_v47 = vpack.c.bf16 %v351_v40, %v347_v39  ;;  %v346_v48 = vld [vmem:[#allocation8 + $0x300] sm:$0xff]  ;;  %v313_v50 = vld [vmem:[#allocation8 + $0x1f8] sm:$0xff]  ;;  %v355_v51 = vld [vmem:[#allocation8 + $0x348] sm:$0xff] }
  0xa6   :  { %1749 = vmatpush1.msk.msra.mxu0 %vm170_vm1, %v151_v43  ;;  %v304_v43 = vld [vmem:[#allocation8 + $0x1b0] sm:$0xff]  ;;  %v359_v52 = vld [vmem:[#allocation8 + $0x368] sm:$0xff]  ;;  %v317_v58 = vld [vmem:[#allocation8 + $0x218] sm:$0xff] }
  0xa7   :  { %242 = vmatmul.mubr.f32.vlgmr.msra.gmra.mrb[0].mxu0 %v2788_v28  ;;  %1856 = vmatprep.subr.bf16.mxu0 %v1855_v44  ;;  %v276_v28 = vld [vmem:[#allocation8 + $0xd0] sm:$0xff]  ;;  %v1837_v44 = vpack.c.bf16 %v342_v37, %v338_v36  ;;  %v1881_v53 = vpack.c.bf16 %v304_v43, %v300_v42  ;;  %v1843_v59 = vpack.c.bf16 %v359_v52, %v355_v51  ;;  %v321_v62 = vld [vmem:[#allocation8 + $0x238] sm:$0xff]  ;;  %v367_v0 = vld [vmem:[#allocation8 + $0x3a8] sm:$0xff] }
  0xa8   :  { %1858 = vmatpush1.bf16.msra.mxu0 %v1857_v45  ;;  %1822 = vmatpush1.bf16.msra.mxu1 %v1821_v60  ;;  %v1869_v16 = vpack.c.bf16 %v280_v6, %v276_v28  ;;  %v1879_v45 = vpack.c.bf16 %v305_v38, %v301_v34  ;;  %v308_v54 = vld [vmem:[#allocation8 + $0x1d0] sm:$0xff]  ;;  %v354_v60 = vld [vmem:[#allocation8 + $0x340] sm:$0xff]  ;;  %v1887_v3 = vpack.c.bf16 %v321_v62, %v317_v58  ;;  %v325_v6 = vld [vmem:[#allocation8 + $0x258] sm:$0xff] }
  0xa9   :  { %1860 = vmatprep.subr.bf16.mxu0 %v1859_v49  ;;  %1824 = vmatprep.subr.bf16.mxu1 %v1823_v63  ;;  %v350_v49 = vld [vmem:[#allocation8 + $0x320] sm:$0xff]  ;;  %v312_v55 = vld [vmem:[#allocation8 + $0x1f0] sm:$0xff]  ;;  %v363_v63 = vld [vmem:[#allocation8 + $0x388] sm:$0xff] }
  0xaa   :  { %v1841_v56 = vpack.c.bf16 %v350_v49, %v346_v48  ;;  %v1885_v1 = vpack.c.bf16 %v312_v55, %v308_v54  ;;  %v316_v4 = vld [vmem:[#allocation8 + $0x210] sm:$0xff]  ;;  %v1847_v28 = vpack.c.bf16 %v367_v0, %v363_v63  ;;  %v333_v12 = vld [vmem:[#allocation8 + $0x298] sm:$0xff]  ;;  %v366_v42 = vld [vmem:[#allocation8 + $0x3a0] sm:$0xff] }
  0xab   :  { %v328_v11 = vld [vmem:[#allocation8 + $0x270] sm:$0xff]  ;;  %v337_v13 = vld [vmem:[#allocation8 + $0x2b8] sm:$0xff]  ;;  %v375_v48 = vld [vmem:[#allocation8 + $0x3e8] sm:$0xff] }
  0xac   :  { %1862 = vmatpush1.bf16.msra.mxu0 %v1861_v57  ;;  %1826 = vmatpush1.bf16.msra.mxu1 %v1825_v7  ;;  %v1883_v57 = vpack.c.bf16 %v313_v50, %v309_v46  ;;  %v329_v7 = vld [vmem:[#allocation8 + $0x278] sm:$0xff]  ;;  %v1895_v15 = vpack.c.bf16 %v337_v13, %v333_v12  ;;  %v336_v17 = vld [vmem:[#allocation8 + $0x2b0] sm:$0xff]  ;;  %v370_v52 = vld [vmem:[#allocation8 + $0x3c0] sm:$0xff] }
  0xad   :  { %1864 = vmatprep.subr.bf16.mxu0 %v1863_v61  ;;  %1828 = vmatprep.subr.bf16.mxu1 %v1827_v10  ;;  %v358_v61 = vld [vmem:[#allocation8 + $0x360] sm:$0xff]  ;;  %v1891_v9 = vpack.c.bf16 %v329_v7, %v325_v6  ;;  %v324_v10 = vld [vmem:[#allocation8 + $0x250] sm:$0xff]  ;;  %v341_v18 = vld [vmem:[#allocation8 + $0x2d8] sm:$0xff] }
  0xae   :  { %v1845_v2 = vpack.c.bf16 %v358_v61, %v354_v60  ;;  %v1893_v14 = vpack.c.bf16 %v328_v11, %v324_v10  ;;  %v344_v23 = vld [vmem:[#allocation8 + $0x2f0] sm:$0xff]  ;;  %v349_v24 = vld [vmem:[#allocation8 + $0x318] sm:$0xff] }
  0xaf   :  { %v353_v25 = vld [vmem:[#allocation8 + $0x338] sm:$0xff]  ;;  %v352_v30 = vld [vmem:[#allocation8 + $0x330] sm:$0xff] }
  0xb0   :  { %1866 = vmatpush1.bf16.msra.mxu0 %v1865_v5  ;;  %1830 = vmatpush1.bf16.msra.mxu1 %v1829_v19  ;;  %v320_v5 = vld [vmem:[#allocation8 + $0x230] sm:$0xff]  ;;  %v345_v19 = vld [vmem:[#allocation8 + $0x2f8] sm:$0xff]  ;;  %v1903_v27 = vpack.c.bf16 %v353_v25, %v349_v24 }
  0xb1   :  { %1868 = vmatprep.subr.bf16.mxu0 %v1867_v8  ;;  %1832 = vmatprep.subr.bf16.mxu1 %v1831_v22  ;;  %v1889_v8 = vpack.c.bf16 %v320_v5, %v316_v4  ;;  %v1899_v21 = vpack.c.bf16 %v345_v19, %v341_v18  ;;  %v340_v22 = vld [vmem:[#allocation8 + $0x2d0] sm:$0xff]  ;;  %v357_v31 = vld [vmem:[#allocation8 + $0x358] sm:$0xff] }
  0xb2   :  { %v1901_v26 = vpack.c.bf16 %v344_v23, %v340_v22  ;;  %v360_v36 = vld [vmem:[#allocation8 + $0x370] sm:$0xff]  ;;  %v365_v37 = vld [vmem:[#allocation8 + $0x398] sm:$0xff]  ;;  %v562_v22 = vld [vmem:[#allocation11 + $0x80] sm:$0xff] }
  0xb3   :  { %v369_v38 = vld [vmem:[#allocation8 + $0x3b8] sm:$0xff]  ;;  %v364_v43 = vld [vmem:[#allocation8 + $0x390] sm:$0xff]  ;;  %v570_v23 = vld [vmem:[#allocation11 + $0xc0] sm:$0xff] }
  0xb4   :  { %1870 = vmatpush1.bf16.msra.mxu0 %v1869_v16  ;;  %1834 = vmatpush1.bf16.msra.mxu1 %v1833_v32  ;;  %v332_v16 = vld [vmem:[#allocation8 + $0x290] sm:$0xff]  ;;  %v361_v32 = vld [vmem:[#allocation8 + $0x378] sm:$0xff]  ;;  %v1911_v40 = vpack.c.bf16 %v369_v38, %v365_v37  ;;  %v586_v37 = vld [vmem:[#allocation11 + $0x140] sm:$0xff] }
  0xb5   :  { %1872 = vmatprep.subr.bf16.mxu0 %v1871_v20  ;;  %1836 = vmatprep.subr.bf16.mxu1 %v1835_v35  ;;  %v1897_v20 = vpack.c.bf16 %v336_v17, %v332_v16  ;;  %v1907_v34 = vpack.c.bf16 %v361_v32, %v357_v31  ;;  %v356_v35 = vld [vmem:[#allocation8 + $0x350] sm:$0xff]  ;;  %v373_v49 = vld [vmem:[#allocation8 + $0x3d8] sm:$0xff] }
  0xb6   :  { %v1909_v39 = vpack.c.bf16 %v360_v36, %v356_v35  ;;  %v377_v51 = vld [vmem:[#allocation8 + $0x3f8] sm:$0xff]  ;;  %v555_v60 = vld [vmem:[#allocation11 + $0x48] sm:$0xff]  ;;  %v578_v36 = vld [vmem:[#allocation11 + $0x100] sm:$0xff] }
  0xb7   :  { %v1915_v54 = vpack.c.bf16 %v377_v51, %v373_v49  ;;  %v549_v61 = vld [vmem:[#allocation11 + $0x18] sm:$0xff]  ;;  %v548_v12 = vld [vmem:[#allocation11 + $0x10] sm:$0xff]  ;;  %v571_v16 = vld [vmem:[#allocation11 + $0xc8] sm:$0xff] }
  0xb8   :  { %1874 = vmatpush1.bf16.msra.mxu0 %v1873_v29  ;;  %1838 = vmatpush1.bf16.msra.mxu1 %v1837_v44  ;;  %v348_v29 = vld [vmem:[#allocation8 + $0x310] sm:$0xff]  ;;  %v557_v63 = vld [vmem:[#allocation11 + $0x58] sm:$0xff]  ;;  %v602_v49 = vld [vmem:[#allocation11 + $0x1c0] sm:$0xff] }
  0xb9   :  { %1876 = vmatprep.subr.bf16.mxu0 %v1875_v33  ;;  %1840 = vmatprep.subr.bf16.mxu1 %v1839_v47  ;;  %v1905_v33 = vpack.c.bf16 %v352_v30, %v348_v29  ;;  %v371_v47 = vld [vmem:[#allocation8 + $0x3c8] sm:$0xff]  ;;  %v2047_v0 = vpack.c.bf16 %v557_v63, %v549_v61  ;;  %v153_v4 = vld [vmem:[#allocation7] sm:$0x3]  ;;  %v556_v13 = vld [vmem:[#allocation11 + $0x50] sm:$0xff] }
  0xba   :  { %v1851_v50 = vpack.c.bf16 %v375_v48, %v371_v47  ;;  %v565_v17 = vld [vmem:[#allocation11 + $0x98] sm:$0xff]  ;;  %v572_v29 = vld [vmem:[#allocation11 + $0xd0] sm:$0xff]  ;;  %v579_v30 = vld [vmem:[#allocation11 + $0x108] sm:$0xff] }
  0xbb   :  { %v573_v18 = vld [vmem:[#allocation11 + $0xd8] sm:$0xff]  ;;  %v587_v31 = vld [vmem:[#allocation11 + $0x148] sm:$0xff]  ;;  %v594_v48 = vld [vmem:[#allocation11 + $0x180] sm:$0xff] }
  0xbc   :  { %1878 = vmatpush1.bf16.msra.mxu0 %v1877_v41  ;;  %1842 = vmatpush1.bf16.msra.mxu1 %v1841_v56  ;;  %v362_v41 = vld [vmem:[#allocation8 + $0x380] sm:$0xff]  ;;  %v372_v56 = vld [vmem:[#allocation8 + $0x3d0] sm:$0xff]  ;;  %v1927_v38 = vpack.c.bf16 %v587_v31, %v579_v30 }
  0xbd   :  { %1880 = vmatprep.subr.bf16.mxu0 %v1879_v45  ;;  %1844 = vmatprep.subr.bf16.mxu1 %v1843_v59  ;;  %v1849_v44 = vpack.c.bf16 %v366_v42, %v362_v41  ;;  %v368_v45 = vld [vmem:[#allocation8 + $0x3b0] sm:$0xff]  ;;  %v581_v32 = vld [vmem:[#allocation11 + $0x118] sm:$0xff]  ;;  %v618_v61 = vld [vmem:[#allocation11 + $0x240] sm:$0xff] }
  0xbe   :  { %v1913_v46 = vpack.c.bf16 %v368_v45, %v364_v43  ;;  %v547_v59 = vld [vmem:[#allocation11 + $0x8] sm:$0xff]  ;;  %v588_v41 = vld [vmem:[#allocation11 + $0x150] sm:$0xff]  ;;  %v605_v45 = vld [vmem:[#allocation11 + $0x1d8] sm:$0xff] }
  0xbf   :  { %v1919_v62 = vpack.c.bf16 %v555_v60, %v547_v59  ;;  %v595_v42 = vld [vmem:[#allocation11 + $0x188] sm:$0xff]  ;;  %v610_v60 = vld [vmem:[#allocation11 + $0x200] sm:$0xff]  ;;  %v661_v31 = vld [vmem:[#allocation11 + $0x398] sm:$0xff] }
  0xc0   :  { %1882 = vmatpush1.bf16.msra.mxu0 %v1881_v53  ;;  %1846 = vmatpush1.bf16.msra.mxu1 %v1845_v2  ;;  %v374_v53 = vld [vmem:[#allocation8 + $0x3e0] sm:$0xff]  ;;  %v603_v43 = vld [vmem:[#allocation11 + $0x1c8] sm:$0xff] }
  0xc1   :  { %1884 = vmatprep.subr.bf16.mxu0 %v1883_v57  ;;  %1848 = vmatprep.subr.bf16.mxu1 %v1847_v28  ;;  %v1853_v55 = vpack.c.bf16 %v374_v53, %v370_v52  ;;  %v376_v57 = vld [vmem:[#allocation8 + $0x3f0] sm:$0xff] }
  0xc2   :  { %v1917_v58 = vpack.c.bf16 %v376_v57, %v372_v56  ;;  %v596_v52 = vld [vmem:[#allocation11 + $0x190] sm:$0xff]  ;;  %v613_v56 = vld [vmem:[#allocation11 + $0x218] sm:$0xff]  ;;  %v667_v30 = vld [vmem:[#allocation11 + $0x3c8] sm:$0xff] }
  0xc3   :  { %v604_v53 = vld [vmem:[#allocation11 + $0x1d0] sm:$0xff]  ;;  %v621_v57 = vld [vmem:[#allocation11 + $0x258] sm:$0xff] }
  0xc4   :  { %1886 = vmatpush1.bf16.msra.mxu0 %v1885_v1  ;;  %1850 = vmatpush1.bf16.msra.mxu1 %v1849_v44  ;;  %v155_v1 = vlaneseq  ;;  %v597_v44 = vld [vmem:[#allocation11 + $0x198] sm:$0xff]  ;;  %v2061_v59 = vpack.c.bf16 %v604_v53, %v596_v52  ;;  %v2063_v63 = vpack.c.bf16 %v621_v57, %v613_v56  ;;  %v684_v52 = vld [vmem:[#allocation11 + $0x450] sm:$0xff]  ;;  %v691_v53 = vld [vmem:[#allocation11 + $0x488] sm:$0xff] }
  0xc5   :  { %1888 = vmatprep.subr.bf16.mxu0 %v1887_v3  ;;  %1852 = vmatprep.subr.bf16.mxu1 %v1851_v50  ;;  %v1931_v50 = vpack.c.bf16 %v603_v43, %v595_v42  ;;  %v2059_v51 = vpack.c.bf16 %v605_v45, %v597_v44  ;;  %v683_v42 = vld [vmem:[#allocation11 + $0x448] sm:$0xff]  ;;  %v677_v43 = vld [vmem:[#allocation11 + $0x418] sm:$0xff] }
  0xc6   :  { %v2795_v2 = vshrl.u32 %v155_v1, 7  ;;  %v620_v1 = vld [vmem:[#allocation11 + $0x250] sm:$0xff]  ;;  %v685_v44 = vld [vmem:[#allocation11 + $0x458] sm:$0xff] }
  0xc7   :  { %v701_v56 = vld [vmem:[#allocation11 + $0x4d8] sm:$0xff] }
  0xc8   :  { %1890 = vmatpush1.bf16.msra.mxu0 %v1889_v8  ;;  %1854 = vmatpush1.bf16.msra.mxu1 %v1853_v55  ;;  %v2798_v3 = vsub.s32 0, %v2795_v2  ;;  %v2801_v5 = vsub.s32 1, %v2795_v2  ;;  %v546_v8 = vld [vmem:[#allocation11] sm:$0xff]  ;;  %v619_v55 = vld [vmem:[#allocation11 + $0x248] sm:$0xff] }
  0xc9   :  { %1892 = vmatprep.subr.bf16.mxu0 %v1891_v9  ;;  %1920 = vmatprep.subr.bf16.mxu1 %v1919_v62  ;;  %v554_v9 = vld [vmem:[#allocation11 + $0x40] sm:$0xff] }
  0xca   :  { %v158_v28 = vrot.slane %v153_v4, %v2798_v3  ;;  %v162_v6 = vrot.slane %v153_v4, %v2801_v5  ;;  %v627_v4 = vld [vmem:[#allocation11 + $0x288] sm:$0xff] }
  0xcc   :  { %1894 = vmatpush1.bf16.msra.mxu0 %v1893_v14  ;;  %v563_v14 = vld [vmem:[#allocation11 + $0x88] sm:$0xff] }
  0xcd   :  { %1896 = vmatprep.subr.bf16.mxu0 %v1895_v15  ;;  %v1923_v25 = vpack.c.bf16 %v571_v16, %v563_v14  ;;  %v628_v14 = vld [vmem:[#allocation11 + $0x290] sm:$0xff]  ;;  %v643_v16 = vld [vmem:[#allocation11 + $0x308] sm:$0xff] }
  0xd0   :  { %1898 = vmatpush1.bf16.msra.mxu0 %v1897_v20  ;;  %v1921_v20 = vpack.c.bf16 %v554_v9, %v546_v8  ;;  %v1937_v8 = vpack.c.bf16 %v618_v61, %v610_v60  ;;  %v698_v60 = vld [vmem:[#allocation11 + $0x4c0] sm:$0xff] }
  0xd1   :  { %1900 = vmatprep.subr.bf16.mxu0 %v1899_v21  ;;  %v2049_v21 = vpack.c.bf16 %v556_v13, %v548_v12 }
  0xd4   :  { %1902 = vmatpush1.bf16.msra.mxu0 %v1901_v26  ;;  %v2051_v26 = vpack.c.bf16 %v573_v18, %v565_v17  ;;  %v651_v17 = vld [vmem:[#allocation11 + $0x348] sm:$0xff]  ;;  %v645_v18 = vld [vmem:[#allocation11 + $0x318] sm:$0xff] }
  0xd5   :  { %1904 = vmatprep.subr.bf16.mxu0 %v1903_v27  ;;  %v564_v27 = vld [vmem:[#allocation11 + $0x90] sm:$0xff] }
  0xd6   :  { %v2053_v35 = vpack.c.bf16 %v572_v29, %v564_v27  ;;  %v652_v27 = vld [vmem:[#allocation11 + $0x350] sm:$0xff]  ;;  %v659_v29 = vld [vmem:[#allocation11 + $0x388] sm:$0xff] }
  0xd8   :  { %1906 = vmatpush1.bf16.msra.mxu0 %v1905_v33  ;;  %v589_v33 = vld [vmem:[#allocation11 + $0x158] sm:$0xff] }
  0xd9   :  { %1908 = vmatprep.subr.bf16.mxu0 %v1907_v34  ;;  %v1925_v34 = vpack.c.bf16 %v570_v23, %v562_v22  ;;  %v642_v22 = vld [vmem:[#allocation11 + $0x300] sm:$0xff] }
  0xda   :  { %v650_v23 = vld [vmem:[#allocation11 + $0x340] sm:$0xff] }
  0xdc   :  { %1910 = vmatpush1.bf16.msra.mxu0 %v1909_v39  ;;  %v2055_v39 = vpack.c.bf16 %v589_v33, %v581_v32  ;;  %v669_v32 = vld [vmem:[#allocation11 + $0x3d8] sm:$0xff]  ;;  %v1945_v33 = vpack.c.bf16 %v650_v23, %v642_v22  ;;  %v730_v22 = vld [vmem:[#allocation11 + $0x5c0] sm:$0xff] }
  0xdd   :  { %1912 = vmatprep.subr.bf16.mxu0 %v1911_v40  ;;  %v580_v40 = vld [vmem:[#allocation11 + $0x110] sm:$0xff] }
  0xde   :  { %v2057_v47 = vpack.c.bf16 %v588_v41, %v580_v40  ;;  %v668_v40 = vld [vmem:[#allocation11 + $0x3d0] sm:$0xff]  ;;  %v675_v41 = vld [vmem:[#allocation11 + $0x408] sm:$0xff] }
  0xe0   :  { %1914 = vmatpush1.bf16.msra.mxu0 %v1913_v46  ;;  %v1929_v46 = vpack.c.bf16 %v586_v37, %v578_v36  ;;  %v666_v36 = vld [vmem:[#allocation11 + $0x3c0] sm:$0xff]  ;;  %v1947_v37 = vpack.c.bf16 %v667_v30, %v659_v29  ;;  %v747_v29 = vld [vmem:[#allocation11 + $0x648] sm:$0xff]  ;;  %v741_v30 = vld [vmem:[#allocation11 + $0x618] sm:$0xff] }
  0xe1   :  { %1916 = vmatprep.subr.bf16.mxu0 %v1915_v54  ;;  %v611_v54 = vld [vmem:[#allocation11 + $0x208] sm:$0xff] }
  0xe2   :  { %v1935_v62 = vpack.c.bf16 %v619_v55, %v611_v54  ;;  %v699_v54 = vld [vmem:[#allocation11 + $0x4c8] sm:$0xff]  ;;  %v693_v55 = vld [vmem:[#allocation11 + $0x498] sm:$0xff] }
  0xe3   :  { %v1955_v61 = vpack.c.bf16 %v699_v54, %v691_v53  ;;  %v779_v53 = vld [vmem:[#allocation11 + $0x748] sm:$0xff]  ;;  %v773_v54 = vld [vmem:[#allocation11 + $0x718] sm:$0xff] }
  0xe4   :  { %1918 = vmatpush1.bf16.msra.mxu0 %v1917_v58  ;;  %v1933_v58 = vpack.c.bf16 %v602_v49, %v594_v48  ;;  %v682_v48 = vld [vmem:[#allocation11 + $0x440] sm:$0xff]  ;;  %v1951_v49 = vpack.c.bf16 %v683_v42, %v675_v41  ;;  %v763_v41 = vld [vmem:[#allocation11 + $0x6c8] sm:$0xff]  ;;  %v757_v42 = vld [vmem:[#allocation11 + $0x698] sm:$0xff] }
  0xe5   :  { %2048 = vmatprep.subr.bf16.mxu0 %v2047_v0  ;;  %v612_v0 = vld [vmem:[#allocation11 + $0x210] sm:$0xff] }
  0xe6   :  { %v2065_v9 = vpack.c.bf16 %v620_v1, %v612_v0  ;;  %v700_v0 = vld [vmem:[#allocation11 + $0x4d0] sm:$0xff]  ;;  %v707_v1 = vld [vmem:[#allocation11 + $0x508] sm:$0xff] }
 0x17a   :  { %v243_v7 = vpop.f32.mrb[0].mxu0 }
 0x17b   :  { %v244_v10 = vadd.f32 %v243_v7, %v158_v28  ;;  %v245_v11 = vpop.f32.mrb[1].mxu0  ;;  %v635_v28 = vld [vmem:[#allocation11 + $0x2c8] sm:$0xff]  ;;  %v637_v7 = vld [vmem:[#allocation11 + $0x2d8] sm:$0xff] }
 0x17c   :  { %v246_v15 = vadd.f32 %v245_v11, %v162_v6  ;;  %v629_v6 = vld [vmem:[#allocation11 + $0x298] sm:$0xff]  ;;  %v634_v11 = vld [vmem:[#allocation11 + $0x2c0] sm:$0xff]  ;;  %v1939_v12 = vpack.c.bf16 %v635_v28, %v627_v4  ;;  %v715_v4 = vld [vmem:[#allocation11 + $0x548] sm:$0xff] }
 0x17d   :  { %v248_v24 = vmax.f32 %v244_v10, 0.0  ;;  %v626_v10 = vld [vmem:[#allocation11 + $0x280] sm:$0xff]  ;;  %v2067_v13 = vpack.c.bf16 %v637_v7, %v629_v6  ;;  %v709_v28 = vld [vmem:[#allocation11 + $0x518] sm:$0xff] }
 0x17e   :  { %v249_v19 = vmax.f32 %v246_v15, 0.0  ;;  %v636_v15 = vld [vmem:[#allocation11 + $0x2d0] sm:$0xff]  ;;  %v717_v6 = vld [vmem:[#allocation11 + $0x558] sm:$0xff] }
 0x180   :  { %464 = vmatprep.mubr.f32.mxu1 %v249_v19  ;;  %535 = vmatprep.mubr.f32.mxu0 %v249_v19  ;;  %v653_v19 = vld [vmem:[#allocation11 + $0x358] sm:$0xff] }
 0x181   :  { %465 = vmatmul.mubr.f32.vlgmr.msra.gmra.mrb[0].mxu1 %v248_v24  ;;  %536 = vmatmul.mubr.f32.vlgmr.msra.gmra.mrb[2].mxu0 %v248_v24  ;;  %v1943_v24 = vpack.c.bf16 %v651_v17, %v643_v16  ;;  %v731_v16 = vld [vmem:[#allocation11 + $0x5c8] sm:$0xff]  ;;  %v725_v17 = vld [vmem:[#allocation11 + $0x598] sm:$0xff] }
 0x182   :  { %1922 = vmatpush1.bf16.msra.mxu1 %v1921_v20  ;;  %2050 = vmatpush1.bf16.msra.mxu0 %v2049_v21  ;;  %v1941_v20 = vpack.c.bf16 %v634_v11, %v626_v10  ;;  %v2069_v21 = vpack.c.bf16 %v636_v15, %v628_v14  ;;  %v714_v10 = vld [vmem:[#allocation11 + $0x540] sm:$0xff]  ;;  %v1959_v11 = vpack.c.bf16 %v715_v4, %v707_v1  ;;  %v716_v14 = vld [vmem:[#allocation11 + $0x550] sm:$0xff]  ;;  %v723_v15 = vld [vmem:[#allocation11 + $0x588] sm:$0xff] }
 0x183   :  { %1924 = vmatprep.subr.bf16.mxu1 %v1923_v25  ;;  %2052 = vmatprep.subr.bf16.mxu0 %v2051_v26  ;;  %v2071_v25 = vpack.c.bf16 %v653_v19, %v645_v18  ;;  %v644_v26 = vld [vmem:[#allocation11 + $0x310] sm:$0xff]  ;;  %v733_v18 = vld [vmem:[#allocation11 + $0x5d8] sm:$0xff]  ;;  %v1963_v23 = vpack.c.bf16 %v731_v16, %v723_v15  ;;  %v787_v4 = vld [vmem:[#allocation11 + $0x788] sm:$0xff] }
 0x184   :  { %v803_v16 = vld [vmem:[#allocation11 + $0x808] sm:$0xff] }
 0x186   :  { %1926 = vmatpush1.bf16.msra.mxu1 %v1925_v34  ;;  %2054 = vmatpush1.bf16.msra.mxu0 %v2053_v35  ;;  %v2073_v34 = vpack.c.bf16 %v652_v27, %v644_v26  ;;  %v658_v35 = vld [vmem:[#allocation11 + $0x380] sm:$0xff]  ;;  %v732_v26 = vld [vmem:[#allocation11 + $0x5d0] sm:$0xff]  ;;  %v739_v27 = vld [vmem:[#allocation11 + $0x608] sm:$0xff] }
 0x187   :  { %1928 = vmatprep.subr.bf16.mxu1 %v1927_v38  ;;  %2056 = vmatprep.subr.bf16.mxu0 %v2055_v39  ;;  %v2075_v38 = vpack.c.bf16 %v669_v32, %v661_v31  ;;  %v660_v39 = vld [vmem:[#allocation11 + $0x390] sm:$0xff]  ;;  %v1949_v45 = vpack.c.bf16 %v666_v36, %v658_v35  ;;  %v749_v31 = vld [vmem:[#allocation11 + $0x658] sm:$0xff]  ;;  %v746_v35 = vld [vmem:[#allocation11 + $0x640] sm:$0xff]  ;;  %v1967_v36 = vpack.c.bf16 %v747_v29, %v739_v27 }
 0x18a   :  { %1930 = vmatpush1.bf16.msra.mxu1 %v1929_v46  ;;  %2058 = vmatpush1.bf16.msra.mxu0 %v2057_v47  ;;  %v2077_v46 = vpack.c.bf16 %v668_v40, %v660_v39  ;;  %v674_v47 = vld [vmem:[#allocation11 + $0x400] sm:$0xff]  ;;  %v748_v39 = vld [vmem:[#allocation11 + $0x650] sm:$0xff]  ;;  %v755_v40 = vld [vmem:[#allocation11 + $0x688] sm:$0xff] }
 0x18b   :  { %1932 = vmatprep.subr.bf16.mxu1 %v1931_v50  ;;  %2060 = vmatprep.subr.bf16.mxu0 %v2059_v51  ;;  %v2079_v50 = vpack.c.bf16 %v685_v44, %v677_v43  ;;  %v676_v51 = vld [vmem:[#allocation11 + $0x410] sm:$0xff]  ;;  %v1953_v57 = vpack.c.bf16 %v682_v48, %v674_v47  ;;  %v765_v43 = vld [vmem:[#allocation11 + $0x6d8] sm:$0xff]  ;;  %v762_v47 = vld [vmem:[#allocation11 + $0x6c0] sm:$0xff]  ;;  %v1971_v48 = vpack.c.bf16 %v763_v41, %v755_v40 }
 0x18c   :  { %v827_v40 = vld [vmem:[#allocation11 + $0x8c8] sm:$0xff]  ;;  %v821_v41 = vld [vmem:[#allocation11 + $0x898] sm:$0xff] }
 0x18e   :  { %1934 = vmatpush1.bf16.msra.mxu1 %v1933_v58  ;;  %2062 = vmatpush1.bf16.msra.mxu0 %v2061_v59  ;;  %v2081_v58 = vpack.c.bf16 %v684_v52, %v676_v51  ;;  %v690_v59 = vld [vmem:[#allocation11 + $0x480] sm:$0xff]  ;;  %v764_v51 = vld [vmem:[#allocation11 + $0x6d0] sm:$0xff]  ;;  %v771_v52 = vld [vmem:[#allocation11 + $0x708] sm:$0xff] }
 0x18f   :  { %1936 = vmatprep.subr.bf16.mxu1 %v1935_v62  ;;  %2064 = vmatprep.subr.bf16.mxu0 %v2063_v63  ;;  %v2083_v62 = vpack.c.bf16 %v701_v56, %v693_v55  ;;  %v692_v63 = vld [vmem:[#allocation11 + $0x490] sm:$0xff]  ;;  %v1957_v7 = vpack.c.bf16 %v698_v60, %v690_v59  ;;  %v781_v55 = vld [vmem:[#allocation11 + $0x758] sm:$0xff]  ;;  %v1975_v59 = vpack.c.bf16 %v779_v53, %v771_v52 }
 0x190   :  { %v2103_v60 = vpack.c.bf16 %v781_v55, %v773_v54  ;;  %v843_v54 = vld [vmem:[#allocation11 + $0x948] sm:$0xff]  ;;  %v837_v55 = vld [vmem:[#allocation11 + $0x918] sm:$0xff] }
 0x192   :  { %1938 = vmatpush1.bf16.msra.mxu1 %v1937_v8  ;;  %2066 = vmatpush1.bf16.msra.mxu0 %v2065_v9  ;;  %v2085_v8 = vpack.c.bf16 %v700_v0, %v692_v63  ;;  %v706_v9 = vld [vmem:[#allocation11 + $0x500] sm:$0xff]  ;;  %v780_v63 = vld [vmem:[#allocation11 + $0x750] sm:$0xff] }
 0x193   :  { %1940 = vmatprep.subr.bf16.mxu1 %v1939_v12  ;;  %2068 = vmatprep.subr.bf16.mxu0 %v2067_v13  ;;  %v2087_v12 = vpack.c.bf16 %v717_v6, %v709_v28  ;;  %v708_v13 = vld [vmem:[#allocation11 + $0x510] sm:$0xff]  ;;  %v1961_v19 = vpack.c.bf16 %v714_v10, %v706_v9  ;;  %v795_v28 = vld [vmem:[#allocation11 + $0x7c8] sm:$0xff]  ;;  %v789_v6 = vld [vmem:[#allocation11 + $0x798] sm:$0xff] }
 0x194   :  { %v786_v9 = vld [vmem:[#allocation11 + $0x780] sm:$0xff] }
 0x195   :  { %v794_v10 = vld [vmem:[#allocation11 + $0x7c0] sm:$0xff] }
 0x196   :  { %1942 = vmatpush1.bf16.msra.mxu1 %v1941_v20  ;;  %2070 = vmatpush1.bf16.msra.mxu0 %v2069_v21  ;;  %v2089_v20 = vpack.c.bf16 %v716_v14, %v708_v13  ;;  %v722_v21 = vld [vmem:[#allocation11 + $0x580] sm:$0xff]  ;;  %v788_v13 = vld [vmem:[#allocation11 + $0x790] sm:$0xff] }
 0x197   :  { %1944 = vmatprep.subr.bf16.mxu1 %v1943_v24  ;;  %2072 = vmatprep.subr.bf16.mxu0 %v2071_v25  ;;  %v2091_v24 = vpack.c.bf16 %v733_v18, %v725_v17  ;;  %v724_v25 = vld [vmem:[#allocation11 + $0x590] sm:$0xff]  ;;  %v1965_v32 = vpack.c.bf16 %v730_v22, %v722_v21  ;;  %v811_v17 = vld [vmem:[#allocation11 + $0x848] sm:$0xff]  ;;  %v805_v18 = vld [vmem:[#allocation11 + $0x818] sm:$0xff] }
 0x198   :  { %v796_v14 = vld [vmem:[#allocation11 + $0x7d0] sm:$0xff]  ;;  %v2805_v22 = vld [vmem:[#allocation10] sm:$0xf] }
 0x199   :  { %v2109_v15 = vpack.c.bf16 %v796_v14, %v788_v13  ;;  %v852_v14 = vld [vmem:[#allocation11 + $0x990] sm:$0xff] }
 0x19a   :  { %1946 = vmatpush1.bf16.msra.mxu1 %v1945_v33  ;;  %2074 = vmatpush1.bf16.msra.mxu0 %v2073_v34  ;;  %v2093_v33 = vpack.c.bf16 %v732_v26, %v724_v25  ;;  %v738_v34 = vld [vmem:[#allocation11 + $0x600] sm:$0xff]  ;;  %v387_v25 = vrot.slane %v2805_v22, %v2801_v5 }
 0x19b   :  { %1948 = vmatprep.subr.bf16.mxu1 %v1947_v37  ;;  %2076 = vmatprep.subr.bf16.mxu0 %v2075_v38  ;;  %v2095_v37 = vpack.c.bf16 %v749_v31, %v741_v30  ;;  %v740_v38 = vld [vmem:[#allocation11 + $0x610] sm:$0xff]  ;;  %v1969_v44 = vpack.c.bf16 %v746_v35, %v738_v34  ;;  %v802_v30 = vld [vmem:[#allocation11 + $0x800] sm:$0xff] }
 0x19c   :  { %v810_v34 = vld [vmem:[#allocation11 + $0x840] sm:$0xff]  ;;  %v804_v35 = vld [vmem:[#allocation11 + $0x810] sm:$0xff] }
 0x19e   :  { %1950 = vmatpush1.bf16.msra.mxu1 %v1949_v45  ;;  %2078 = vmatpush1.bf16.msra.mxu0 %v2077_v46  ;;  %v2097_v45 = vpack.c.bf16 %v748_v39, %v740_v38  ;;  %v754_v46 = vld [vmem:[#allocation11 + $0x680] sm:$0xff]  ;;  %v819_v38 = vld [vmem:[#allocation11 + $0x888] sm:$0xff] }
 0x19f   :  { %1952 = vmatprep.subr.bf16.mxu1 %v1951_v49  ;;  %2080 = vmatprep.subr.bf16.mxu0 %v2079_v50  ;;  %v2099_v49 = vpack.c.bf16 %v765_v43, %v757_v42  ;;  %v756_v50 = vld [vmem:[#allocation11 + $0x690] sm:$0xff]  ;;  %v1973_v56 = vpack.c.bf16 %v762_v47, %v754_v46  ;;  %v829_v42 = vld [vmem:[#allocation11 + $0x8d8] sm:$0xff]  ;;  %v818_v46 = vld [vmem:[#allocation11 + $0x880] sm:$0xff]  ;;  %v1987_v52 = vpack.c.bf16 %v827_v40, %v819_v38 }
 0x1a0   :  { %v826_v47 = vld [vmem:[#allocation11 + $0x8c0] sm:$0xff]  ;;  %v2115_v53 = vpack.c.bf16 %v829_v42, %v821_v41  ;;  %v884_v42 = vld [vmem:[#allocation11 + $0xa90] sm:$0xff] }
 0x1a1   :  { %v882_v38 = vld [vmem:[#allocation11 + $0xa80] sm:$0xff] }
 0x1a2   :  { %1954 = vmatpush1.bf16.msra.mxu1 %v1953_v57  ;;  %2082 = vmatpush1.bf16.msra.mxu0 %v2081_v58  ;;  %v2101_v57 = vpack.c.bf16 %v764_v51, %v756_v50  ;;  %v770_v58 = vld [vmem:[#allocation11 + $0x700] sm:$0xff]  ;;  %v828_v50 = vld [vmem:[#allocation11 + $0x8d0] sm:$0xff]  ;;  %v835_v51 = vld [vmem:[#allocation11 + $0x908] sm:$0xff] }
 0x1a3   :  { %1956 = vmatprep.subr.bf16.mxu1 %v1955_v61  ;;  %2084 = vmatprep.subr.bf16.mxu0 %v2083_v62  ;;  %v778_v61 = vld [vmem:[#allocation11 + $0x740] sm:$0xff]  ;;  %v772_v62 = vld [vmem:[#allocation11 + $0x710] sm:$0xff] }
 0x1a4   :  { %v1977_v0 = vpack.c.bf16 %v778_v61, %v770_v58  ;;  %v2105_v1 = vpack.c.bf16 %v780_v63, %v772_v62  ;;  %v1989_v58 = vpack.c.bf16 %v826_v47, %v818_v46  ;;  %v842_v61 = vld [vmem:[#allocation11 + $0x940] sm:$0xff]  ;;  %v1991_v62 = vpack.c.bf16 %v843_v54, %v835_v51  ;;  %v907_v46 = vld [vmem:[#allocation11 + $0xb48] sm:$0xff]  ;;  %v901_v47 = vld [vmem:[#allocation11 + $0xb18] sm:$0xff] }
 0x1a6   :  { %1958 = vmatpush1.bf16.msra.mxu1 %v1957_v7  ;;  %2086 = vmatpush1.bf16.msra.mxu0 %v2085_v8  ;;  %v1979_v7 = vpack.c.bf16 %v795_v28, %v787_v4  ;;  %v797_v8 = vld [vmem:[#allocation11 + $0x7d8] sm:$0xff]  ;;  %v851_v4 = vld [vmem:[#allocation11 + $0x988] sm:$0xff] }
 0x1a7   :  { %1960 = vmatprep.subr.bf16.mxu1 %v1959_v11  ;;  %2088 = vmatprep.subr.bf16.mxu0 %v2087_v12  ;;  %v2107_v11 = vpack.c.bf16 %v797_v8, %v789_v6  ;;  %v1981_v12 = vpack.c.bf16 %v794_v10, %v786_v9  ;;  %v859_v28 = vld [vmem:[#allocation11 + $0x9c8] sm:$0xff]  ;;  %v853_v6 = vld [vmem:[#allocation11 + $0x998] sm:$0xff]  ;;  %v850_v10 = vld [vmem:[#allocation11 + $0x980] sm:$0xff] }
 0x1aa   :  { %1962 = vmatpush1.bf16.msra.mxu1 %v1961_v19  ;;  %2090 = vmatpush1.bf16.msra.mxu0 %v2089_v20  ;;  %v1983_v19 = vpack.c.bf16 %v811_v17, %v803_v16  ;;  %v813_v20 = vld [vmem:[#allocation11 + $0x858] sm:$0xff]  ;;  %v867_v16 = vld [vmem:[#allocation11 + $0xa08] sm:$0xff] }
 0x1ab   :  { %1964 = vmatprep.subr.bf16.mxu1 %v1963_v23  ;;  %2092 = vmatprep.subr.bf16.mxu0 %v2091_v24  ;;  %v2111_v21 = vpack.c.bf16 %v813_v20, %v805_v18  ;;  %v394_v23 = vsub.s32 3, %v2795_v2  ;;  %v383_v24 = vrot.slane %v2805_v22, %v2798_v3  ;;  %v875_v17 = vld [vmem:[#allocation11 + $0xa48] sm:$0xff]  ;;  %v869_v18 = vld [vmem:[#allocation11 + $0xa18] sm:$0xff] }
 0x1ad   :  { %v395_v26 = vrot.slane %v2805_v22, %v394_v23 }
 0x1ae   :  { %1966 = vmatpush1.bf16.msra.mxu1 %v1965_v32  ;;  %2094 = vmatpush1.bf16.msra.mxu0 %v2093_v33 }
 0x1af   :  { %1968 = vmatprep.subr.bf16.mxu1 %v1967_v36  ;;  %2096 = vmatprep.subr.bf16.mxu0 %v2095_v37  ;;  %v812_v36 = vld [vmem:[#allocation11 + $0x850] sm:$0xff] }
 0x1b2   :  { %1970 = vmatpush1.bf16.msra.mxu1 %v1969_v44  ;;  %2098 = vmatpush1.bf16.msra.mxu0 %v2097_v45  ;;  %v1985_v44 = vpack.c.bf16 %v810_v34, %v802_v30  ;;  %v2113_v45 = vpack.c.bf16 %v812_v36, %v804_v35  ;;  %v868_v30 = vld [vmem:[#allocation11 + $0xa10] sm:$0xff]  ;;  %v885_v34 = vld [vmem:[#allocation11 + $0xa98] sm:$0xff] }
 0x1b3   :  { %1972 = vmatprep.subr.bf16.mxu1 %v1971_v48  ;;  %2100 = vmatprep.subr.bf16.mxu0 %v2099_v49  ;;  %v820_v49 = vld [vmem:[#allocation11 + $0x890] sm:$0xff]  ;;  %v893_v35 = vld [vmem:[#allocation11 + $0xad8] sm:$0xff] }
 0x1b4   :  { %v2131_v41 = vpack.c.bf16 %v893_v35, %v885_v34  ;;  %v948_v35 = vld [vmem:[#allocation11 + $0xc90] sm:$0xff] }
 0x1b6   :  { %1974 = vmatpush1.bf16.msra.mxu1 %v1973_v56  ;;  %2102 = vmatpush1.bf16.msra.mxu0 %v2101_v57  ;;  %v845_v56 = vld [vmem:[#allocation11 + $0x958] sm:$0xff] }
 0x1b7   :  { %1976 = vmatprep.subr.bf16.mxu1 %v1975_v59  ;;  %2104 = vmatprep.subr.bf16.mxu0 %v2103_v60  ;;  %v2117_v59 = vpack.c.bf16 %v828_v50, %v820_v49  ;;  %v834_v60 = vld [vmem:[#allocation11 + $0x900] sm:$0xff]  ;;  %v2119_v63 = vpack.c.bf16 %v845_v56, %v837_v55  ;;  %v909_v49 = vld [vmem:[#allocation11 + $0xb58] sm:$0xff]  ;;  %v900_v56 = vld [vmem:[#allocation11 + $0xb10] sm:$0xff] }
 0x1b8   :  { %v1993_v8 = vpack.c.bf16 %v842_v61, %v834_v60  ;;  %v2135_v55 = vpack.c.bf16 %v909_v49, %v901_v47  ;;  %v923_v60 = vld [vmem:[#allocation11 + $0xbc8] sm:$0xff]  ;;  %v917_v61 = vld [vmem:[#allocation11 + $0xb98] sm:$0xff]  ;;  %v964_v49 = vld [vmem:[#allocation11 + $0xd10] sm:$0xff] }
 0x1ba   :  { %1978 = vmatpush1.bf16.msra.mxu1 %v1977_v0  ;;  %2106 = vmatpush1.bf16.msra.mxu0 %v2105_v1  ;;  %v836_v0 = vld [vmem:[#allocation11 + $0x910] sm:$0xff] }
 0x1bb   :  { %1980 = vmatprep.subr.bf16.mxu1 %v1979_v7  ;;  %2108 = vmatprep.subr.bf16.mxu0 %v2107_v11  ;;  %v844_v1 = vld [vmem:[#allocation11 + $0x950] sm:$0xff]  ;;  %v861_v7 = vld [vmem:[#allocation11 + $0x9d8] sm:$0xff]  ;;  %v858_v11 = vld [vmem:[#allocation11 + $0x9c0] sm:$0xff] }
 0x1bc   :  { %v2121_v9 = vpack.c.bf16 %v844_v1, %v836_v0  ;;  %v2123_v13 = vpack.c.bf16 %v861_v7, %v853_v6  ;;  %v1997_v20 = vpack.c.bf16 %v858_v11, %v850_v10  ;;  %v914_v1 = vld [vmem:[#allocation11 + $0xb80] sm:$0xff]  ;;  %v916_v7 = vld [vmem:[#allocation11 + $0xb90] sm:$0xff]  ;;  %v939_v10 = vld [vmem:[#allocation11 + $0xc48] sm:$0xff] }
 0x1bd   :  { %v933_v11 = vld [vmem:[#allocation11 + $0xc18] sm:$0xff] }
 0x1be   :  { %1982 = vmatpush1.bf16.msra.mxu1 %v1981_v12  ;;  %2110 = vmatpush1.bf16.msra.mxu0 %v2109_v15  ;;  %v1995_v12 = vpack.c.bf16 %v859_v28, %v851_v4  ;;  %v860_v15 = vld [vmem:[#allocation11 + $0x9d0] sm:$0xff]  ;;  %v922_v4 = vld [vmem:[#allocation11 + $0xbc0] sm:$0xff] }
 0x1bf   :  { %1984 = vmatprep.subr.bf16.mxu1 %v1983_v19  ;;  %2112 = vmatprep.subr.bf16.mxu0 %v2111_v21  ;;  %v877_v19 = vld [vmem:[#allocation11 + $0xa58] sm:$0xff]  ;;  %v2125_v21 = vpack.c.bf16 %v860_v15, %v852_v14  ;;  %v930_v15 = vld [vmem:[#allocation11 + $0xc00] sm:$0xff] }
 0x254   :  { %v466_v27 = vpop.f32.mrb[0].mxu1  ;;  %v2815_v29 = vpop.f32.mrb[2].mxu0 }
 0x255   :  { %v467_v31 = vadd.f32 %v466_v27, %v383_v24  ;;  %v468_v32 = vpop.f32.mrb[1].mxu1  ;;  %v539_v33 = vpop.f32.mrb[3].mxu0  ;;  %v866_v24 = vld [vmem:[#allocation11 + $0xa00] sm:$0xff]  ;;  %v2127_v27 = vpack.c.bf16 %v877_v19, %v869_v18  ;;  %v932_v19 = vld [vmem:[#allocation11 + $0xc10] sm:$0xff] }
 0x256   :  { %v469_v37 = vadd.f32 %v468_v32, %v387_v25  ;;  %v540_v39 = vadd.f32 %v539_v33, %v395_v26  ;;  %v874_v25 = vld [vmem:[#allocation11 + $0xa40] sm:$0xff]  ;;  %v1999_v26 = vpack.c.bf16 %v875_v17, %v867_v16  ;;  %v883_v32 = vld [vmem:[#allocation11 + $0xa88] sm:$0xff] }
 0x257   :  { %v2819_v48 = vmax.f32 %v467_v31, 0.0  ;;  %v876_v31 = vld [vmem:[#allocation11 + $0xa50] sm:$0xff]  ;;  %v891_v33 = vld [vmem:[#allocation11 + $0xac8] sm:$0xff]  ;;  %v2001_v36 = vpack.c.bf16 %v874_v25, %v866_v24  ;;  %v938_v16 = vld [vmem:[#allocation11 + $0xc40] sm:$0xff] }
 0x258   :  { %v2817_v43 = vmax.f32 %v469_v37, 0.0  ;;  %v2823_v57 = vmax.f32 %v540_v39, 0.0  ;;  %v2129_v37 = vpack.c.bf16 %v876_v31, %v868_v30  ;;  %v890_v39 = vld [vmem:[#allocation11 + $0xac0] sm:$0xff]  ;;  %v2003_v40 = vpack.c.bf16 %v891_v33, %v883_v32  ;;  %v955_v24 = vld [vmem:[#allocation11 + $0xcc8] sm:$0xff]  ;;  %v949_v25 = vld [vmem:[#allocation11 + $0xc98] sm:$0xff] }
 0x259   :  { %v2005_v50 = vpack.c.bf16 %v890_v39, %v882_v38  ;;  %v946_v31 = vld [vmem:[#allocation11 + $0xc80] sm:$0xff]  ;;  %v971_v38 = vld [vmem:[#allocation11 + $0xd48] sm:$0xff]  ;;  %v965_v39 = vld [vmem:[#allocation11 + $0xd18] sm:$0xff] }
 0x25a   :  { %1164 = vmatprep.mubr.f32.mxu1 %v2817_v43  ;;  %1306 = vmatprep.mubr.f32.mxu0 %v2817_v43  ;;  %v954_v32 = vld [vmem:[#allocation11 + $0xcc0] sm:$0xff] }
 0x25b   :  { %1165 = vmatmul.mubr.f32.vlgmr.msra.gmra.mrb[2].mxu1 %v2819_v48  ;;  %1307 = vmatmul.mubr.f32.vlgmr.msra.gmra.mrb[4].mxu0 %v2819_v48 }
 0x25c   :  { %1986 = vmatpush1.bf16.msra.mxu1 %v1985_v44  ;;  %2114 = vmatpush1.bf16.msra.mxu0 %v2113_v45  ;;  %v892_v44 = vld [vmem:[#allocation11 + $0xad0] sm:$0xff]  ;;  %v899_v45 = vld [vmem:[#allocation11 + $0xb08] sm:$0xff] }
 0x25d   :  { %1235 = vmatprep.mubr.f32.mxu1 %v2823_v57  ;;  %1377 = vmatprep.mubr.f32.mxu0 %v2823_v57  ;;  %v2133_v51 = vpack.c.bf16 %v892_v44, %v884_v42  ;;  %v2007_v54 = vpack.c.bf16 %v907_v46, %v899_v45  ;;  %v962_v44 = vld [vmem:[#allocation11 + $0xd00] sm:$0xff] }
 0x25e   :  { %1988 = vmatprep.subr.bf16.mxu1 %v1987_v52  ;;  %2116 = vmatprep.subr.bf16.mxu0 %v2115_v53  ;;  %v898_v52 = vld [vmem:[#allocation11 + $0xb00] sm:$0xff] }
 0x25f   :  { %v906_v53 = vld [vmem:[#allocation11 + $0xb40] sm:$0xff] }
 0x260   :  { %1990 = vmatpush1.bf16.msra.mxu1 %v1989_v58  ;;  %2118 = vmatpush1.bf16.msra.mxu0 %v2117_v59  ;;  %v908_v58 = vld [vmem:[#allocation11 + $0xb50] sm:$0xff]  ;;  %v915_v59 = vld [vmem:[#allocation11 + $0xb88] sm:$0xff]  ;;  %v970_v45 = vld [vmem:[#allocation11 + $0xd40] sm:$0xff] }
 0x261   :  { %1992 = vmatprep.subr.bf16.mxu1 %v1991_v62  ;;  %2120 = vmatprep.subr.bf16.mxu0 %v2119_v63  ;;  %v925_v62 = vld [vmem:[#allocation11 + $0xbd8] sm:$0xff]  ;;  %v2009_v63 = vpack.c.bf16 %v906_v53, %v898_v52  ;;  %v2137_v0 = vpack.c.bf16 %v908_v58, %v900_v56  ;;  %v2011_v28 = vpack.c.bf16 %v923_v60, %v915_v59  ;;  %v987_v52 = vld [vmem:[#allocation11 + $0xdc8] sm:$0xff]  ;;  %v978_v58 = vld [vmem:[#allocation11 + $0xd80] sm:$0xff] }
 0x262   :  { %v2139_v6 = vpack.c.bf16 %v925_v62, %v917_v61  ;;  %v981_v53 = vld [vmem:[#allocation11 + $0xd98] sm:$0xff]  ;;  %v986_v59 = vld [vmem:[#allocation11 + $0xdc0] sm:$0xff]  ;;  %v980_v62 = vld [vmem:[#allocation11 + $0xd90] sm:$0xff] }
 0x264   :  { %1994 = vmatpush1.bf16.msra.mxu1 %v1993_v8  ;;  %2122 = vmatpush1.bf16.msra.mxu0 %v2121_v9  ;;  %v924_v8 = vld [vmem:[#allocation11 + $0xbd0] sm:$0xff]  ;;  %v931_v9 = vld [vmem:[#allocation11 + $0xc08] sm:$0xff] }
 0x265   :  { %1996 = vmatprep.subr.bf16.mxu1 %v1995_v12  ;;  %2124 = vmatprep.subr.bf16.mxu0 %v2123_v13  ;;  %v941_v12 = vld [vmem:[#allocation11 + $0xc58] sm:$0xff]  ;;  %v2013_v13 = vpack.c.bf16 %v922_v4, %v914_v1  ;;  %v2141_v14 = vpack.c.bf16 %v924_v8, %v916_v7  ;;  %v2015_v17 = vpack.c.bf16 %v939_v10, %v931_v9  ;;  %v1003_v1 = vld [vmem:[#allocation11 + $0xe48] sm:$0xff]  ;;  %v994_v8 = vld [vmem:[#allocation11 + $0xe00] sm:$0xff] }
 0x266   :  { %v2143_v18 = vpack.c.bf16 %v941_v12, %v933_v11  ;;  %v997_v4 = vld [vmem:[#allocation11 + $0xe18] sm:$0xff]  ;;  %v1002_v9 = vld [vmem:[#allocation11 + $0xe40] sm:$0xff]  ;;  %v996_v12 = vld [vmem:[#allocation11 + $0xe10] sm:$0xff] }
 0x268   :  { %1998 = vmatpush1.bf16.msra.mxu1 %v1997_v20  ;;  %2126 = vmatpush1.bf16.msra.mxu0 %v2125_v21  ;;  %v940_v20 = vld [vmem:[#allocation11 + $0xc50] sm:$0xff]  ;;  %v947_v21 = vld [vmem:[#allocation11 + $0xc88] sm:$0xff] }
 0x269   :  { %2000 = vmatprep.subr.bf16.mxu1 %v1999_v26  ;;  %2128 = vmatprep.subr.bf16.mxu0 %v2127_v27  ;;  %v957_v26 = vld [vmem:[#allocation11 + $0xcd8] sm:$0xff]  ;;  %v2017_v27 = vpack.c.bf16 %v938_v16, %v930_v15  ;;  %v2145_v30 = vpack.c.bf16 %v940_v20, %v932_v19  ;;  %v2019_v33 = vpack.c.bf16 %v955_v24, %v947_v21  ;;  %v1019_v15 = vld [vmem:[#allocation11 + $0xec8] sm:$0xff]  ;;  %v1010_v20 = vld [vmem:[#allocation11 + $0xe80] sm:$0xff] }
 0x26a   :  { %v2147_v34 = vpack.c.bf16 %v957_v26, %v949_v25  ;;  %v1013_v16 = vld [vmem:[#allocation11 + $0xe98] sm:$0xff]  ;;  %v1018_v21 = vld [vmem:[#allocation11 + $0xec0] sm:$0xff]  ;;  %v1012_v26 = vld [vmem:[#allocation11 + $0xe90] sm:$0xff] }
 0x26c   :  { %2002 = vmatpush1.bf16.msra.mxu1 %v2001_v36  ;;  %2130 = vmatpush1.bf16.msra.mxu0 %v2129_v37  ;;  %v956_v36 = vld [vmem:[#allocation11 + $0xcd0] sm:$0xff]  ;;  %v963_v37 = vld [vmem:[#allocation11 + $0xd08] sm:$0xff] }
 0x26d   :  { %2004 = vmatprep.subr.bf16.mxu1 %v2003_v40  ;;  %2132 = vmatprep.subr.bf16.mxu0 %v2131_v41  ;;  %v973_v40 = vld [vmem:[#allocation11 + $0xd58] sm:$0xff]  ;;  %v2021_v41 = vpack.c.bf16 %v954_v32, %v946_v31  ;;  %v2149_v42 = vpack.c.bf16 %v956_v36, %v948_v35  ;;  %v2023_v46 = vpack.c.bf16 %v971_v38, %v963_v37  ;;  %v1035_v31 = vld [vmem:[#allocation11 + $0xf48] sm:$0xff]  ;;  %v1026_v36 = vld [vmem:[#allocation11 + $0xf00] sm:$0xff]  ;;  %v390_v38 = vsub.s32 2, %v2795_v2 }
 0x26e   :  { %v2151_v47 = vpack.c.bf16 %v973_v40, %v965_v39  ;;  %v1029_v32 = vld [vmem:[#allocation11 + $0xf18] sm:$0xff]  ;;  %v1034_v37 = vld [vmem:[#allocation11 + $0xf40] sm:$0xff] }
 0x270   :  { %2006 = vmatpush1.bf16.msra.mxu1 %v2005_v50  ;;  %2134 = vmatpush1.bf16.msra.mxu0 %v2133_v51  ;;  %v972_v50 = vld [vmem:[#allocation11 + $0xd50] sm:$0xff]  ;;  %v979_v51 = vld [vmem:[#allocation11 + $0xd88] sm:$0xff] }
 0x271   :  { %2008 = vmatprep.subr.bf16.mxu1 %v2007_v54  ;;  %2136 = vmatprep.subr.bf16.mxu0 %v2135_v55  ;;  %v989_v54 = vld [vmem:[#allocation11 + $0xdd8] sm:$0xff]  ;;  %v2025_v55 = vpack.c.bf16 %v970_v45, %v962_v44  ;;  %v2153_v56 = vpack.c.bf16 %v972_v50, %v964_v49  ;;  %v2027_v60 = vpack.c.bf16 %v987_v52, %v979_v51  ;;  %v1043_v44 = vld [vmem:[#allocation11 + $0xf88] sm:$0xff]  ;;  %v1042_v51 = vld [vmem:[#allocation11 + $0xf80] sm:$0xff] }
 0x272   :  { %v2155_v61 = vpack.c.bf16 %v989_v54, %v981_v53  ;;  %v1051_v45 = vld [vmem:[#allocation11 + $0xfc8] sm:$0xff]  ;;  %v2041_v49 = vpack.c.bf16 %v1034_v37, %v1026_v36  ;;  %v1050_v52 = vld [vmem:[#allocation11 + $0xfc0] sm:$0xff]  ;;  %v391_v53 = vrot.slane %v2805_v22, %v390_v38  ;;  %v592_v36 = vld [vmem:[#allocation11 + $0x170] sm:$0xff] }
 0x273   :  { %v2043_v54 = vpack.c.bf16 %v1051_v45, %v1043_v44  ;;  %v599_v37 = vld [vmem:[#allocation11 + $0x1a8] sm:$0xff] }
 0x274   :  { %2010 = vmatpush1.bf16.msra.mxu1 %v2009_v63  ;;  %2138 = vmatpush1.bf16.msra.mxu0 %v2137_v0  ;;  %v988_v63 = vld [vmem:[#allocation11 + $0xdd0] sm:$0xff]  ;;  %v995_v0 = vld [vmem:[#allocation11 + $0xe08] sm:$0xff] }
 0x275   :  { %2012 = vmatprep.subr.bf16.mxu1 %v2011_v28  ;;  %2140 = vmatprep.subr.bf16.mxu0 %v2139_v6  ;;  %v1005_v28 = vld [vmem:[#allocation11 + $0xe58] sm:$0xff]  ;;  %v2029_v6 = vpack.c.bf16 %v986_v59, %v978_v58  ;;  %v2157_v7 = vpack.c.bf16 %v988_v63, %v980_v62  ;;  %v2031_v10 = vpack.c.bf16 %v1003_v1, %v995_v0  ;;  %v1052_v58 = vld [vmem:[#allocation11 + $0xfd0] sm:$0xff]  ;;  %v551_v59 = vld [vmem:[#allocation11 + $0x28] sm:$0xff] }
 0x276   :  { %v2159_v11 = vpack.c.bf16 %v1005_v28, %v997_v4  ;;  %v561_v62 = vld [vmem:[#allocation11 + $0x78] sm:$0xff]  ;;  %v2045_v63 = vpack.c.bf16 %v1050_v52, %v1042_v51  ;;  %v538_v1 = vadd.f32 %v2815_v29, %v391_v53  ;;  %v550_v28 = vld [vmem:[#allocation11 + $0x20] sm:$0xff]  ;;  %v615_v51 = vld [vmem:[#allocation11 + $0x228] sm:$0xff] }
 0x277   :  { %v623_v52 = vld [vmem:[#allocation11 + $0x268] sm:$0xff]  ;;  %v617_v53 = vld [vmem:[#allocation11 + $0x238] sm:$0xff] }
 0x278   :  { %2014 = vmatpush1.bf16.msra.mxu1 %v2013_v13  ;;  %2142 = vmatpush1.bf16.msra.mxu0 %v2141_v14  ;;  %v1004_v13 = vld [vmem:[#allocation11 + $0xe50] sm:$0xff]  ;;  %v1011_v14 = vld [vmem:[#allocation11 + $0xe88] sm:$0xff] }
 0x279   :  { %2016 = vmatprep.subr.bf16.mxu1 %v2015_v17  ;;  %2144 = vmatprep.subr.bf16.mxu0 %v2143_v18  ;;  %v1021_v17 = vld [vmem:[#allocation11 + $0xed8] sm:$0xff]  ;;  %v2033_v18 = vpack.c.bf16 %v1002_v9, %v994_v8  ;;  %v2161_v19 = vpack.c.bf16 %v1004_v13, %v996_v12  ;;  %v2035_v24 = vpack.c.bf16 %v1019_v15, %v1011_v14  ;;  %v560_v8 = vld [vmem:[#allocation11 + $0x70] sm:$0xff]  ;;  %v567_v9 = vld [vmem:[#allocation11 + $0xa8] sm:$0xff]  ;;  %v2834_v14 = vmax.f32 %v538_v1, 0.0 }
 0x27a   :  { %v2163_v25 = vpack.c.bf16 %v1021_v17, %v1013_v16  ;;  %v577_v12 = vld [vmem:[#allocation11 + $0xf8] sm:$0xff]  ;;  %v566_v15 = vld [vmem:[#allocation11 + $0xa0] sm:$0xff]  ;;  %v568_v17 = vld [vmem:[#allocation11 + $0xb0] sm:$0xff] }
 0x27b   :  { %v574_v16 = vld [vmem:[#allocation11 + $0xe0] sm:$0xff]  ;;  %v639_v1 = vld [vmem:[#allocation11 + $0x2e8] sm:$0xff] }
 0x27c   :  { %2018 = vmatpush1.bf16.msra.mxu1 %v2017_v27  ;;  %2146 = vmatpush1.bf16.msra.mxu0 %v2145_v30  ;;  %v1020_v27 = vld [vmem:[#allocation11 + $0xed0] sm:$0xff]  ;;  %v1027_v30 = vld [vmem:[#allocation11 + $0xf08] sm:$0xff] }
 0x27d   :  { %2020 = vmatprep.subr.bf16.mxu1 %v2019_v33  ;;  %2148 = vmatprep.subr.bf16.mxu0 %v2147_v34  ;;  %v1037_v33 = vld [vmem:[#allocation11 + $0xf58] sm:$0xff]  ;;  %v2037_v34 = vpack.c.bf16 %v1018_v21, %v1010_v20  ;;  %v2165_v35 = vpack.c.bf16 %v1020_v27, %v1012_v26  ;;  %v2039_v39 = vpack.c.bf16 %v1035_v31, %v1027_v30  ;;  %v576_v20 = vld [vmem:[#allocation11 + $0xf0] sm:$0xff]  ;;  %v583_v21 = vld [vmem:[#allocation11 + $0x128] sm:$0xff] }
 0x27e   :  { %v2167_v40 = vpack.c.bf16 %v1037_v33, %v1029_v32  ;;  %v593_v26 = vld [vmem:[#allocation11 + $0x178] sm:$0xff]  ;;  %v2181_v27 = vpack.c.bf16 %v574_v16, %v566_v15  ;;  %v2309_v30 = vpack.c.bf16 %v576_v20, %v568_v17  ;;  %v582_v32 = vld [vmem:[#allocation11 + $0x120] sm:$0xff] }
 0x27f   :  { %v590_v33 = vld [vmem:[#allocation11 + $0x160] sm:$0xff]  ;;  %v649_v15 = vld [vmem:[#allocation11 + $0x338] sm:$0xff] }
 0x280   :  { %2022 = vmatpush1.bf16.msra.mxu1 %v2021_v41  ;;  %2150 = vmatpush1.bf16.msra.mxu0 %v2149_v42  ;;  %v1028_v41 = vld [vmem:[#allocation11 + $0xf10] sm:$0xff]  ;;  %v657_v16 = vld [vmem:[#allocation11 + $0x378] sm:$0xff]  ;;  %v646_v20 = vld [vmem:[#allocation11 + $0x320] sm:$0xff] }
 0x281   :  { %2024 = vmatprep.subr.bf16.mxu1 %v2023_v46  ;;  %2152 = vmatprep.subr.bf16.mxu0 %v2151_v47  ;;  %v1036_v42 = vld [vmem:[#allocation11 + $0xf50] sm:$0xff]  ;;  %v1045_v46 = vld [vmem:[#allocation11 + $0xf98] sm:$0xff] }
 0x282   :  { %v1053_v47 = vld [vmem:[#allocation11 + $0xfd8] sm:$0xff]  ;;  %v2169_v50 = vpack.c.bf16 %v1036_v42, %v1028_v41  ;;  %v2185_v42 = vpack.c.bf16 %v590_v33, %v582_v32 }
 0x283   :  { %v609_v41 = vld [vmem:[#allocation11 + $0x1f8] sm:$0xff] }
 0x284   :  { %2026 = vmatpush1.bf16.msra.mxu1 %v2025_v55  ;;  %2154 = vmatpush1.bf16.msra.mxu0 %v2153_v56  ;;  %v2171_v55 = vpack.c.bf16 %v1053_v47, %v1045_v46  ;;  %v1044_v56 = vld [vmem:[#allocation11 + $0xf90] sm:$0xff]  ;;  %v606_v46 = vld [vmem:[#allocation11 + $0x1e0] sm:$0xff]  ;;  %v673_v32 = vld [vmem:[#allocation11 + $0x3f8] sm:$0xff] }
 0x285   :  { %2028 = vmatprep.subr.bf16.mxu1 %v2027_v60  ;;  %2156 = vmatprep.subr.bf16.mxu0 %v2155_v61  ;;  %v559_v60 = vld [vmem:[#allocation11 + $0x68] sm:$0xff]  ;;  %v553_v61 = vld [vmem:[#allocation11 + $0x38] sm:$0xff]  ;;  %v2173_v0 = vpack.c.bf16 %v1052_v58, %v1044_v56  ;;  %v600_v47 = vld [vmem:[#allocation11 + $0x1b0] sm:$0xff]  ;;  %v2191_v58 = vpack.c.bf16 %v623_v52, %v615_v51 }
 0x286   :  { %v2175_v4 = vpack.c.bf16 %v559_v60, %v551_v59  ;;  %v2303_v22 = vpack.c.bf16 %v561_v62, %v553_v61  ;;  %v614_v59 = vld [vmem:[#allocation11 + $0x220] sm:$0xff]  ;;  %v616_v61 = vld [vmem:[#allocation11 + $0x230] sm:$0xff] }
 0x287   :  { %v622_v60 = vld [vmem:[#allocation11 + $0x260] sm:$0xff]  ;;  %v680_v52 = vld [vmem:[#allocation11 + $0x430] sm:$0xff] }
 0x288   :  { %2030 = vmatpush1.bf16.msra.mxu1 %v2029_v6  ;;  %2158 = vmatpush1.bf16.msra.mxu0 %v2157_v7  ;;  %v558_v6 = vld [vmem:[#allocation11 + $0x60] sm:$0xff]  ;;  %v552_v7 = vld [vmem:[#allocation11 + $0x30] sm:$0xff] }
 0x289   :  { %2032 = vmatprep.subr.bf16.mxu1 %v2031_v10  ;;  %2160 = vmatprep.subr.bf16.mxu0 %v2159_v11  ;;  %v575_v10 = vld [vmem:[#allocation11 + $0xe8] sm:$0xff]  ;;  %v569_v11 = vld [vmem:[#allocation11 + $0xb8] sm:$0xff]  ;;  %v2177_v13 = vpack.c.bf16 %v558_v6, %v550_v28  ;;  %v2305_v29 = vpack.c.bf16 %v560_v8, %v552_v7  ;;  %v2193_v28 = vpack.c.bf16 %v622_v60, %v614_v59  ;;  %v630_v8 = vld [vmem:[#allocation11 + $0x2a0] sm:$0xff] }
 0x28a   :  { %v686_v51 = vld [vmem:[#allocation11 + $0x460] sm:$0xff]  ;;  %v705_v59 = vld [vmem:[#allocation11 + $0x4f8] sm:$0xff] }
 0x28c   :  { %2034 = vmatpush1.bf16.msra.mxu1 %v2033_v18  ;;  %2162 = vmatpush1.bf16.msra.mxu0 %v2161_v19  ;;  %v2179_v18 = vpack.c.bf16 %v575_v10, %v567_v9  ;;  %v2307_v19 = vpack.c.bf16 %v577_v12, %v569_v11  ;;  %v638_v9 = vld [vmem:[#allocation11 + $0x2e0] sm:$0xff]  ;;  %v632_v10 = vld [vmem:[#allocation11 + $0x2b0] sm:$0xff] }
 0x28d   :  { %2036 = vmatprep.subr.bf16.mxu1 %v2035_v24  ;;  %2164 = vmatprep.subr.bf16.mxu0 %v2163_v25  ;;  %v591_v24 = vld [vmem:[#allocation11 + $0x168] sm:$0xff]  ;;  %v585_v25 = vld [vmem:[#allocation11 + $0x138] sm:$0xff]  ;;  %v640_v12 = vld [vmem:[#allocation11 + $0x2f0] sm:$0xff]  ;;  %v2197_v17 = vpack.c.bf16 %v638_v9, %v630_v8 }
 0x28e   :  { %v2183_v31 = vpack.c.bf16 %v591_v24, %v583_v21  ;;  %v654_v21 = vld [vmem:[#allocation11 + $0x360] sm:$0xff]  ;;  %v648_v24 = vld [vmem:[#allocation11 + $0x330] sm:$0xff]  ;;  %v721_v8 = vld [vmem:[#allocation11 + $0x578] sm:$0xff] }
 0x28f   :  { %v2201_v33 = vpack.c.bf16 %v654_v21, %v646_v20  ;;  %v737_v20 = vld [vmem:[#allocation11 + $0x5f8] sm:$0xff] }
 0x290   :  { %2038 = vmatpush1.bf16.msra.mxu1 %v2037_v34  ;;  %2166 = vmatpush1.bf16.msra.mxu0 %v2165_v35  ;;  %v584_v34 = vld [vmem:[#allocation11 + $0x130] sm:$0xff]  ;;  %v2311_v35 = vpack.c.bf16 %v593_v26, %v585_v25  ;;  %v2327_v25 = vpack.c.bf16 %v657_v16, %v649_v15 }
 0x291   :  { %2040 = vmatprep.subr.bf16.mxu1 %v2039_v39  ;;  %2168 = vmatprep.subr.bf16.mxu0 %v2167_v40  ;;  %v607_v39 = vld [vmem:[#allocation11 + $0x1e8] sm:$0xff]  ;;  %v601_v40 = vld [vmem:[#allocation11 + $0x1b8] sm:$0xff]  ;;  %v2313_v44 = vpack.c.bf16 %v592_v36, %v584_v34  ;;  %v656_v26 = vld [vmem:[#allocation11 + $0x370] sm:$0xff] }
 0x292   :  { %v2187_v45 = vpack.c.bf16 %v607_v39, %v599_v37  ;;  %v2329_v34 = vpack.c.bf16 %v656_v26, %v648_v24  ;;  %v662_v36 = vld [vmem:[#allocation11 + $0x3a0] sm:$0xff]  ;;  %v664_v39 = vld [vmem:[#allocation11 + $0x3b0] sm:$0xff] }
 0x293   :  { %v670_v37 = vld [vmem:[#allocation11 + $0x3e0] sm:$0xff]  ;;  %v720_v16 = vld [vmem:[#allocation11 + $0x570] sm:$0xff] }
 0x294   :  { %2042 = vmatpush1.bf16.msra.mxu1 %v2041_v49  ;;  %2170 = vmatpush1.bf16.msra.mxu0 %v2169_v50  ;;  %v2315_v49 = vpack.c.bf16 %v609_v41, %v601_v40  ;;  %v608_v50 = vld [vmem:[#allocation11 + $0x1f0] sm:$0xff]  ;;  %v726_v26 = vld [vmem:[#allocation11 + $0x5a0] sm:$0xff] }
 0x295   :  { %2044 = vmatprep.subr.bf16.mxu1 %v2043_v54  ;;  %2172 = vmatprep.subr.bf16.mxu0 %v2171_v55  ;;  %v625_v54 = vld [vmem:[#allocation11 + $0x278] sm:$0xff]  ;;  %v2317_v56 = vpack.c.bf16 %v608_v50, %v600_v47  ;;  %v672_v41 = vld [vmem:[#allocation11 + $0x3f0] sm:$0xff]  ;;  %v678_v50 = vld [vmem:[#allocation11 + $0x420] sm:$0xff] }
 0x296   :  { %v2319_v62 = vpack.c.bf16 %v625_v54, %v617_v53  ;;  %v2333_v47 = vpack.c.bf16 %v672_v41, %v664_v39  ;;  %v688_v54 = vld [vmem:[#allocation11 + $0x470] sm:$0xff]  ;;  %v2209_v60 = vpack.c.bf16 %v686_v51, %v678_v50  ;;  %v742_v41 = vld [vmem:[#allocation11 + $0x620] sm:$0xff]  ;;  %v769_v50 = vld [vmem:[#allocation11 + $0x6f8] sm:$0xff] }
 0x298   :  { %2046 = vmatpush1.bf16.msra.mxu1 %v2045_v63  ;;  %2174 = vmatpush1.bf16.msra.mxu0 %v2173_v0  ;;  %v624_v63 = vld [vmem:[#allocation11 + $0x270] sm:$0xff]  ;;  %v631_v0 = vld [vmem:[#allocation11 + $0x2a8] sm:$0xff] }
 0x299   :  { %2176 = vmatprep.subr.bf16.mxu1 %v2175_v4  ;;  %2304 = vmatprep.subr.bf16.mxu0 %v2303_v22  ;;  %v633_v4 = vld [vmem:[#allocation11 + $0x2b8] sm:$0xff]  ;;  %v2321_v6 = vpack.c.bf16 %v624_v63, %v616_v61  ;;  %v2195_v7 = vpack.c.bf16 %v639_v1, %v631_v0  ;;  %v2337_v61 = vpack.c.bf16 %v688_v54, %v680_v52  ;;  %v694_v63 = vld [vmem:[#allocation11 + $0x4a0] sm:$0xff]  ;;  %v696_v1 = vld [vmem:[#allocation11 + $0x4b0] sm:$0xff] }
 0x29a   :  { %v641_v22 = vld [vmem:[#allocation11 + $0x2f8] sm:$0xff]  ;;  %v702_v0 = vld [vmem:[#allocation11 + $0x4e0] sm:$0xff] }
 0x29b   :  { %1236 = vmatmul.mubr.f32.vlgmr.msra.gmra.mrb[2].mxu1 %v2834_v14  ;;  %1378 = vmatmul.mubr.f32.vlgmr.msra.gmra.mrb[4].mxu0 %v2834_v14  ;;  %v2323_v11 = vpack.c.bf16 %v641_v22, %v633_v4  ;;  %v704_v22 = vld [vmem:[#allocation11 + $0x4f0] sm:$0xff]  ;;  %v2213_v9 = vpack.c.bf16 %v702_v0, %v694_v63  ;;  %v758_v54 = vld [vmem:[#allocation11 + $0x6a0] sm:$0xff]  ;;  %v785_v63 = vld [vmem:[#allocation11 + $0x778] sm:$0xff] }
 0x29c   :  { %2178 = vmatpush1.bf16.msra.mxu1 %v2177_v13  ;;  %1448 = vmatprep.mubr.f32.mxu1 %v2817_v43  ;;  %v647_v13 = vld [vmem:[#allocation11 + $0x328] sm:$0xff] }
 0x29d   :  { %2306 = vmatpush1.bf16.msra.mxu0 %v2305_v29  ;;  %1590 = vmatprep.mubr.f32.mxu0 %v2817_v43  ;;  %v598_v43 = vld [vmem:[#allocation11 + $0x1a0] sm:$0xff]  ;;  %v655_v29 = vld [vmem:[#allocation11 + $0x368] sm:$0xff] }
 0x29e   :  { %2180 = vmatprep.subr.bf16.mxu1 %v2179_v18  ;;  %2308 = vmatprep.subr.bf16.mxu0 %v2307_v19  ;;  %v2189_v55 = vpack.c.bf16 %v606_v46, %v598_v43  ;;  %v2325_v18 = vpack.c.bf16 %v640_v12, %v632_v10  ;;  %v2199_v19 = vpack.c.bf16 %v655_v29, %v647_v13  ;;  %v689_v43 = vld [vmem:[#allocation11 + $0x478] sm:$0xff]  ;;  %v710_v12 = vld [vmem:[#allocation11 + $0x520] sm:$0xff]  ;;  %v712_v29 = vld [vmem:[#allocation11 + $0x530] sm:$0xff] }
 0x29f   :  { %v2205_v46 = vpack.c.bf16 %v670_v37, %v662_v36  ;;  %v2341_v10 = vpack.c.bf16 %v704_v22, %v696_v1  ;;  %v718_v13 = vld [vmem:[#allocation11 + $0x560] sm:$0xff]  ;;  %v2345_v24 = vpack.c.bf16 %v720_v16, %v712_v29  ;;  %v753_v36 = vld [vmem:[#allocation11 + $0x678] sm:$0xff] }
 0x2a0   :  { %2182 = vmatpush1.bf16.msra.mxu1 %v2181_v27  ;;  %v663_v27 = vld [vmem:[#allocation11 + $0x3a8] sm:$0xff]  ;;  %v2217_v21 = vpack.c.bf16 %v718_v13, %v710_v12  ;;  %v774_v22 = vld [vmem:[#allocation11 + $0x720] sm:$0xff]  ;;  %v801_v12 = vld [vmem:[#allocation11 + $0x7f8] sm:$0xff] }
 0x2a1   :  { %2310 = vmatpush1.bf16.msra.mxu0 %v2309_v30  ;;  %2184 = vmatprep.subr.bf16.mxu1 %v2183_v31  ;;  %v671_v30 = vld [vmem:[#allocation11 + $0x3e8] sm:$0xff]  ;;  %v665_v31 = vld [vmem:[#allocation11 + $0x3b8] sm:$0xff]  ;;  %v790_v16 = vld [vmem:[#allocation11 + $0x7a0] sm:$0xff] }
 0x2a2   :  { %2312 = vmatprep.subr.bf16.mxu0 %v2311_v35  ;;  %v2203_v35 = vpack.c.bf16 %v671_v30, %v663_v27  ;;  %v2331_v40 = vpack.c.bf16 %v673_v32, %v665_v31  ;;  %v734_v27 = vld [vmem:[#allocation11 + $0x5e0] sm:$0xff]  ;;  %v728_v30 = vld [vmem:[#allocation11 + $0x5b0] sm:$0xff] }
 0x2a3   :  { %v736_v32 = vld [vmem:[#allocation11 + $0x5f0] sm:$0xff]  ;;  %v2221_v37 = vpack.c.bf16 %v734_v27, %v726_v26  ;;  %v817_v26 = vld [vmem:[#allocation11 + $0x878] sm:$0xff] }
 0x2a4   :  { %2186 = vmatpush1.bf16.msra.mxu1 %v2185_v42  ;;  %v679_v42 = vld [vmem:[#allocation11 + $0x428] sm:$0xff]  ;;  %v2349_v39 = vpack.c.bf16 %v736_v32, %v728_v30  ;;  %v806_v32 = vld [vmem:[#allocation11 + $0x820] sm:$0xff] }
 0x2a5   :  { %2314 = vmatpush1.bf16.msra.mxu0 %v2313_v44  ;;  %2188 = vmatprep.subr.bf16.mxu1 %v2187_v45  ;;  %v687_v44 = vld [vmem:[#allocation11 + $0x468] sm:$0xff]  ;;  %v681_v45 = vld [vmem:[#allocation11 + $0x438] sm:$0xff] }
 0x2a6   :  { %2316 = vmatprep.subr.bf16.mxu0 %v2315_v49  ;;  %v2207_v49 = vpack.c.bf16 %v687_v44, %v679_v42  ;;  %v2335_v53 = vpack.c.bf16 %v689_v43, %v681_v45  ;;  %v750_v42 = vld [vmem:[#allocation11 + $0x660] sm:$0xff]  ;;  %v744_v44 = vld [vmem:[#allocation11 + $0x630] sm:$0xff] }
 0x2a7   :  { %v752_v43 = vld [vmem:[#allocation11 + $0x670] sm:$0xff]  ;;  %v2225_v51 = vpack.c.bf16 %v750_v42, %v742_v41  ;;  %v825_v41 = vld [vmem:[#allocation11 + $0x8b8] sm:$0xff] }
 0x2a8   :  { %2190 = vmatpush1.bf16.msra.mxu1 %v2189_v55  ;;  %v695_v55 = vld [vmem:[#allocation11 + $0x4a8] sm:$0xff]  ;;  %v2353_v52 = vpack.c.bf16 %v752_v43, %v744_v44  ;;  %v833_v42 = vld [vmem:[#allocation11 + $0x8f8] sm:$0xff]  ;;  %v830_v43 = vld [vmem:[#allocation11 + $0x8e0] sm:$0xff] }
 0x2a9   :  { %2318 = vmatpush1.bf16.msra.mxu0 %v2317_v56  ;;  %2192 = vmatprep.subr.bf16.mxu1 %v2191_v58  ;;  %v703_v56 = vld [vmem:[#allocation11 + $0x4e8] sm:$0xff]  ;;  %v697_v58 = vld [vmem:[#allocation11 + $0x4b8] sm:$0xff] }
 0x2aa   :  { %2320 = vmatprep.subr.bf16.mxu0 %v2319_v62  ;;  %v2211_v62 = vpack.c.bf16 %v703_v56, %v695_v55  ;;  %v2339_v4 = vpack.c.bf16 %v705_v59, %v697_v58  ;;  %v766_v55 = vld [vmem:[#allocation11 + $0x6e0] sm:$0xff]  ;;  %v760_v56 = vld [vmem:[#allocation11 + $0x6b0] sm:$0xff] }
 0x2ab   :  { %v768_v59 = vld [vmem:[#allocation11 + $0x6f0] sm:$0xff]  ;;  %v2229_v0 = vpack.c.bf16 %v766_v55, %v758_v54  ;;  %v849_v54 = vld [vmem:[#allocation11 + $0x978] sm:$0xff] }
 0x2ac   :  { %2194 = vmatpush1.bf16.msra.mxu1 %v2193_v28  ;;  %v711_v28 = vld [vmem:[#allocation11 + $0x528] sm:$0xff]  ;;  %v2357_v1 = vpack.c.bf16 %v768_v59, %v760_v56  ;;  %v838_v59 = vld [vmem:[#allocation11 + $0x920] sm:$0xff] }
 0x2ad   :  { %2322 = vmatpush1.bf16.msra.mxu0 %v2321_v6  ;;  %2196 = vmatprep.subr.bf16.mxu1 %v2195_v7  ;;  %v719_v6 = vld [vmem:[#allocation11 + $0x568] sm:$0xff]  ;;  %v713_v7 = vld [vmem:[#allocation11 + $0x538] sm:$0xff] }
 0x2ae   :  { %2324 = vmatprep.subr.bf16.mxu0 %v2323_v11  ;;  %v2215_v11 = vpack.c.bf16 %v719_v6, %v711_v28  ;;  %v2343_v15 = vpack.c.bf16 %v721_v8, %v713_v7  ;;  %v782_v28 = vld [vmem:[#allocation11 + $0x760] sm:$0xff]  ;;  %v776_v6 = vld [vmem:[#allocation11 + $0x730] sm:$0xff] }
 0x2af   :  { %v784_v8 = vld [vmem:[#allocation11 + $0x770] sm:$0xff]  ;;  %v2233_v13 = vpack.c.bf16 %v782_v28, %v774_v22 }
 0x2b0   :  { %2198 = vmatpush1.bf16.msra.mxu1 %v2197_v17  ;;  %v727_v17 = vld [vmem:[#allocation11 + $0x5a8] sm:$0xff]  ;;  %v2361_v29 = vpack.c.bf16 %v784_v8, %v776_v6  ;;  %v862_v8 = vld [vmem:[#allocation11 + $0x9e0] sm:$0xff] }
 0x2b1   :  { %2326 = vmatpush1.bf16.msra.mxu0 %v2325_v18  ;;  %2200 = vmatprep.subr.bf16.mxu1 %v2199_v19  ;;  %v735_v18 = vld [vmem:[#allocation11 + $0x5e8] sm:$0xff]  ;;  %v729_v19 = vld [vmem:[#allocation11 + $0x5b8] sm:$0xff] }
 0x2b2   :  { %2328 = vmatprep.subr.bf16.mxu0 %v2327_v25  ;;  %v2219_v25 = vpack.c.bf16 %v735_v18, %v727_v17  ;;  %v2347_v31 = vpack.c.bf16 %v737_v20, %v729_v19  ;;  %v798_v17 = vld [vmem:[#allocation11 + $0x7e0] sm:$0xff]  ;;  %v792_v18 = vld [vmem:[#allocation11 + $0x7b0] sm:$0xff] }
 0x2b3   :  { %v800_v20 = vld [vmem:[#allocation11 + $0x7f0] sm:$0xff]  ;;  %v2237_v27 = vpack.c.bf16 %v798_v17, %v790_v16 }
 0x2b4   :  { %2202 = vmatpush1.bf16.msra.mxu1 %v2201_v33  ;;  %v743_v33 = vld [vmem:[#allocation11 + $0x628] sm:$0xff]  ;;  %v2365_v30 = vpack.c.bf16 %v800_v20, %v792_v18  ;;  %v870_v18 = vld [vmem:[#allocation11 + $0xa20] sm:$0xff]  ;;  %v872_v20 = vld [vmem:[#allocation11 + $0xa30] sm:$0xff] }
 0x2b5   :  { %2330 = vmatpush1.bf16.msra.mxu0 %v2329_v34  ;;  %2204 = vmatprep.subr.bf16.mxu1 %v2203_v35  ;;  %v751_v34 = vld [vmem:[#allocation11 + $0x668] sm:$0xff]  ;;  %v745_v35 = vld [vmem:[#allocation11 + $0x638] sm:$0xff] }
 0x2b6   :  { %2332 = vmatprep.subr.bf16.mxu0 %v2331_v40  ;;  %v2223_v40 = vpack.c.bf16 %v751_v34, %v743_v33  ;;  %v2351_v45 = vpack.c.bf16 %v753_v36, %v745_v35  ;;  %v814_v33 = vld [vmem:[#allocation11 + $0x860] sm:$0xff]  ;;  %v808_v35 = vld [vmem:[#allocation11 + $0x830] sm:$0xff] }
 0x2b7   :  { %v816_v36 = vld [vmem:[#allocation11 + $0x870] sm:$0xff] }
 0x2b8   :  { %2206 = vmatpush1.bf16.msra.mxu1 %v2205_v46  ;;  %v759_v46 = vld [vmem:[#allocation11 + $0x6a8] sm:$0xff]  ;;  %v2369_v44 = vpack.c.bf16 %v816_v36, %v808_v35  ;;  %v894_v35 = vld [vmem:[#allocation11 + $0xae0] sm:$0xff]  ;;  %v888_v36 = vld [vmem:[#allocation11 + $0xab0] sm:$0xff] }
 0x2b9   :  { %2334 = vmatpush1.bf16.msra.mxu0 %v2333_v47  ;;  %2208 = vmatprep.subr.bf16.mxu1 %v2207_v49  ;;  %v767_v47 = vld [vmem:[#allocation11 + $0x6e8] sm:$0xff]  ;;  %v761_v49 = vld [vmem:[#allocation11 + $0x6b8] sm:$0xff] }
 0x2ba   :  { %2336 = vmatprep.subr.bf16.mxu0 %v2335_v53  ;;  %v2227_v53 = vpack.c.bf16 %v767_v47, %v759_v46  ;;  %v2355_v58 = vpack.c.bf16 %v769_v50, %v761_v49  ;;  %v824_v46 = vld [vmem:[#allocation11 + $0x8b0] sm:$0xff]  ;;  %v839_v50 = vld [vmem:[#allocation11 + $0x928] sm:$0xff] }
 0x2bb   :  { %v832_v49 = vld [vmem:[#allocation11 + $0x8f0] sm:$0xff] }
 0x2bc   :  { %2210 = vmatpush1.bf16.msra.mxu1 %v2209_v60  ;;  %v775_v60 = vld [vmem:[#allocation11 + $0x728] sm:$0xff]  ;;  %v2373_v56 = vpack.c.bf16 %v832_v49, %v824_v46  ;;  %v910_v49 = vld [vmem:[#allocation11 + $0xb60] sm:$0xff] }
 0x2bd   :  { %2338 = vmatpush1.bf16.msra.mxu0 %v2337_v61  ;;  %2212 = vmatprep.subr.bf16.mxu1 %v2211_v62  ;;  %v783_v61 = vld [vmem:[#allocation11 + $0x768] sm:$0xff]  ;;  %v777_v62 = vld [vmem:[#allocation11 + $0x738] sm:$0xff] }
 0x2be   :  { %2340 = vmatprep.subr.bf16.mxu0 %v2339_v4  ;;  %v2231_v4 = vpack.c.bf16 %v783_v61, %v775_v60  ;;  %v2359_v7 = vpack.c.bf16 %v785_v63, %v777_v62  ;;  %v846_v60 = vld [vmem:[#allocation11 + $0x960] sm:$0xff]  ;;  %v840_v61 = vld [vmem:[#allocation11 + $0x930] sm:$0xff] }
 0x2bf   :  { %v848_v63 = vld [vmem:[#allocation11 + $0x970] sm:$0xff]  ;;  %v2249_v22 = vpack.c.bf16 %v846_v60, %v838_v59 }
 0x2c0   :  { %2214 = vmatpush1.bf16.msra.mxu1 %v2213_v9  ;;  %v791_v9 = vld [vmem:[#allocation11 + $0x7a8] sm:$0xff]  ;;  %v2377_v28 = vpack.c.bf16 %v848_v63, %v840_v61  ;;  %v918_v61 = vld [vmem:[#allocation11 + $0xba0] sm:$0xff]  ;;  %v920_v63 = vld [vmem:[#allocation11 + $0xbb0] sm:$0xff] }
 0x2c1   :  { %2342 = vmatpush1.bf16.msra.mxu0 %v2341_v10  ;;  %2216 = vmatprep.subr.bf16.mxu1 %v2215_v11  ;;  %v799_v10 = vld [vmem:[#allocation11 + $0x7e8] sm:$0xff]  ;;  %v793_v11 = vld [vmem:[#allocation11 + $0x7b8] sm:$0xff] }
 0x2c2   :  { %2344 = vmatprep.subr.bf16.mxu0 %v2343_v15  ;;  %v2235_v15 = vpack.c.bf16 %v799_v10, %v791_v9  ;;  %v2363_v19 = vpack.c.bf16 %v801_v12, %v793_v11  ;;  %v856_v9 = vld [vmem:[#allocation11 + $0x9b0] sm:$0xff]  ;;  %v871_v11 = vld [vmem:[#allocation11 + $0xa28] sm:$0xff] }
 0x2c3   :  { %v879_v12 = vld [vmem:[#allocation11 + $0xa68] sm:$0xff] }
 0x2c4   :  { %2218 = vmatpush1.bf16.msra.mxu1 %v2217_v21  ;;  %v807_v21 = vld [vmem:[#allocation11 + $0x828] sm:$0xff]  ;;  %v2255_v17 = vpack.c.bf16 %v879_v12, %v871_v11  ;;  %v944_v12 = vld [vmem:[#allocation11 + $0xc70] sm:$0xff] }
 0x2c5   :  { %2346 = vmatpush1.bf16.msra.mxu0 %v2345_v24  ;;  %2220 = vmatprep.subr.bf16.mxu1 %v2219_v25  ;;  %v815_v24 = vld [vmem:[#allocation11 + $0x868] sm:$0xff]  ;;  %v809_v25 = vld [vmem:[#allocation11 + $0x838] sm:$0xff] }
 0x2c6   :  { %2348 = vmatprep.subr.bf16.mxu0 %v2347_v31  ;;  %v2239_v31 = vpack.c.bf16 %v815_v24, %v807_v21  ;;  %v2367_v34 = vpack.c.bf16 %v817_v26, %v809_v25  ;;  %v880_v24 = vld [vmem:[#allocation11 + $0xa70] sm:$0xff]  ;;  %v887_v25 = vld [vmem:[#allocation11 + $0xaa8] sm:$0xff] }
 0x2c7   :  { %v895_v26 = vld [vmem:[#allocation11 + $0xae8] sm:$0xff] }
 0x2c8   :  { %2222 = vmatpush1.bf16.msra.mxu1 %v2221_v37  ;;  %v823_v37 = vld [vmem:[#allocation11 + $0x8a8] sm:$0xff] }
 0x2c9   :  { %2350 = vmatpush1.bf16.msra.mxu0 %v2349_v39  ;;  %2224 = vmatprep.subr.bf16.mxu1 %v2223_v40  ;;  %v831_v39 = vld [vmem:[#allocation11 + $0x8e8] sm:$0xff]  ;;  %v2241_v40 = vpack.c.bf16 %v814_v33, %v806_v32  ;;  %v2385_v32 = vpack.c.bf16 %v880_v24, %v872_v20  ;;  %v2259_v33 = vpack.c.bf16 %v895_v26, %v887_v25  ;;  %v950_v20 = vld [vmem:[#allocation11 + $0xca0] sm:$0xff]  ;;  %v952_v24 = vld [vmem:[#allocation11 + $0xcb0] sm:$0xff] }
 0x2ca   :  { %2352 = vmatprep.subr.bf16.mxu0 %v2351_v45  ;;  %v822_v45 = vld [vmem:[#allocation11 + $0x8a0] sm:$0xff]  ;;  %v2243_v47 = vpack.c.bf16 %v831_v39, %v823_v37  ;;  %v896_v39 = vld [vmem:[#allocation11 + $0xaf0] sm:$0xff] }
 0x2cb   :  { %v2245_v55 = vpack.c.bf16 %v830_v43, %v822_v45  ;;  %v2389_v43 = vpack.c.bf16 %v896_v39, %v888_v36  ;;  %v960_v26 = vld [vmem:[#allocation11 + $0xcf0] sm:$0xff]  ;;  %v966_v36 = vld [vmem:[#allocation11 + $0xd20] sm:$0xff] }
 0x2cc   :  { %2226 = vmatpush1.bf16.msra.mxu1 %v2225_v51  ;;  %v847_v51 = vld [vmem:[#allocation11 + $0x968] sm:$0xff]  ;;  %v968_v39 = vld [vmem:[#allocation11 + $0xd30] sm:$0xff] }
 0x2cd   :  { %2354 = vmatpush1.bf16.msra.mxu0 %v2353_v52  ;;  %2228 = vmatprep.subr.bf16.mxu1 %v2227_v53  ;;  %v2371_v52 = vpack.c.bf16 %v833_v42, %v825_v41  ;;  %v841_v53 = vld [vmem:[#allocation11 + $0x938] sm:$0xff]  ;;  %v911_v41 = vld [vmem:[#allocation11 + $0xb68] sm:$0xff] }
 0x2ce   :  { %2356 = vmatprep.subr.bf16.mxu0 %v2355_v58  ;;  %v2247_v58 = vpack.c.bf16 %v847_v51, %v839_v50  ;;  %v2375_v62 = vpack.c.bf16 %v849_v54, %v841_v53  ;;  %v905_v42 = vld [vmem:[#allocation11 + $0xb38] sm:$0xff]  ;;  %v904_v50 = vld [vmem:[#allocation11 + $0xb30] sm:$0xff]  ;;  %v919_v53 = vld [vmem:[#allocation11 + $0xba8] sm:$0xff] }
 0x2cf   :  { %v927_v54 = vld [vmem:[#allocation11 + $0xbe8] sm:$0xff] }
 0x2d0   :  { %2230 = vmatpush1.bf16.msra.mxu1 %v2229_v0  ;;  %v855_v0 = vld [vmem:[#allocation11 + $0x9a8] sm:$0xff]  ;;  %v2267_v60 = vpack.c.bf16 %v927_v54, %v919_v53  ;;  %v992_v54 = vld [vmem:[#allocation11 + $0xdf0] sm:$0xff] }
 0x2d1   :  { %2358 = vmatpush1.bf16.msra.mxu0 %v2357_v1  ;;  %2232 = vmatprep.subr.bf16.mxu1 %v2231_v4  ;;  %v863_v1 = vld [vmem:[#allocation11 + $0x9e8] sm:$0xff]  ;;  %v857_v4 = vld [vmem:[#allocation11 + $0x9b8] sm:$0xff] }
 0x2d2   :  { %2360 = vmatprep.subr.bf16.mxu0 %v2359_v7  ;;  %v2251_v6 = vpack.c.bf16 %v863_v1, %v855_v0  ;;  %v854_v7 = vld [vmem:[#allocation11 + $0x9a0] sm:$0xff]  ;;  %v928_v1 = vld [vmem:[#allocation11 + $0xbf0] sm:$0xff] }
 0x2d4   :  { %2234 = vmatpush1.bf16.msra.mxu1 %v2233_v13  ;;  %v873_v13 = vld [vmem:[#allocation11 + $0xa38] sm:$0xff] }
 0x2d5   :  { %2362 = vmatpush1.bf16.msra.mxu0 %v2361_v29  ;;  %2236 = vmatprep.subr.bf16.mxu1 %v2235_v15  ;;  %v881_v29 = vld [vmem:[#allocation11 + $0xa78] sm:$0xff]  ;;  %v2253_v15 = vpack.c.bf16 %v862_v8, %v854_v7  ;;  %v2397_v7 = vpack.c.bf16 %v928_v1, %v920_v63  ;;  %v998_v63 = vld [vmem:[#allocation11 + $0xe20] sm:$0xff]  ;;  %v1000_v1 = vld [vmem:[#allocation11 + $0xe30] sm:$0xff] }
 0x2d6   :  { %2364 = vmatprep.subr.bf16.mxu0 %v2363_v19  ;;  %v878_v19 = vld [vmem:[#allocation11 + $0xa60] sm:$0xff]  ;;  %v2383_v21 = vpack.c.bf16 %v881_v29, %v873_v13  ;;  %v951_v13 = vld [vmem:[#allocation11 + $0xca8] sm:$0xff] }
 0x2d7   :  { %v959_v29 = vld [vmem:[#allocation11 + $0xce8] sm:$0xff] }
 0x2d8   :  { %2238 = vmatpush1.bf16.msra.mxu1 %v2237_v27  ;;  %v889_v27 = vld [vmem:[#allocation11 + $0xab8] sm:$0xff] }
 0x2d9   :  { %2366 = vmatpush1.bf16.msra.mxu0 %v2365_v30  ;;  %2240 = vmatprep.subr.bf16.mxu1 %v2239_v31  ;;  %v897_v30 = vld [vmem:[#allocation11 + $0xaf8] sm:$0xff]  ;;  %v2257_v31 = vpack.c.bf16 %v878_v19, %v870_v18  ;;  %v2275_v19 = vpack.c.bf16 %v959_v29, %v951_v13  ;;  %v1024_v29 = vld [vmem:[#allocation11 + $0xef0] sm:$0xff] }
 0x2da   :  { %2368 = vmatprep.subr.bf16.mxu0 %v2367_v34  ;;  %v886_v34 = vld [vmem:[#allocation11 + $0xaa0] sm:$0xff]  ;;  %v2387_v37 = vpack.c.bf16 %v897_v30, %v889_v27  ;;  %v967_v27 = vld [vmem:[#allocation11 + $0xd28] sm:$0xff] }
 0x2db   :  { %1449 = vmatmul.mubr.f32.vlgmr.msra.gmra.mrb[4].mxu1 %v2819_v48  ;;  %v2261_v45 = vpack.c.bf16 %v894_v35, %v886_v34  ;;  %v975_v30 = vld [vmem:[#allocation11 + $0xd68] sm:$0xff]  ;;  %v2405_v34 = vpack.c.bf16 %v960_v26, %v952_v24  ;;  %v1030_v24 = vld [vmem:[#allocation11 + $0xf20] sm:$0xff]  ;;  %v1032_v26 = vld [vmem:[#allocation11 + $0xf30] sm:$0xff] }
 0x2dc   :  { %1591 = vmatmul.mubr.f32.vlgmr.msra.gmra.mrb[6].mxu0 %v2819_v48  ;;  %2242 = vmatpush1.bf16.msra.mxu1 %v2241_v40  ;;  %v865_v48 = vld [vmem:[#allocation11 + $0x9f8] sm:$0xff]  ;;  %v903_v40 = vld [vmem:[#allocation11 + $0xb28] sm:$0xff]  ;;  %v2279_v35 = vpack.c.bf16 %v975_v30, %v967_v27  ;;  %v1040_v30 = vld [vmem:[#allocation11 + $0xf70] sm:$0xff] }
 0x2dd   :  { %1519 = vmatprep.mubr.f32.mxu1 %v2823_v57  ;;  %2370 = vmatpush1.bf16.msra.mxu0 %v2369_v44  ;;  %v2379_v10 = vpack.c.bf16 %v865_v48, %v857_v4  ;;  %v913_v44 = vld [vmem:[#allocation11 + $0xb78] sm:$0xff]  ;;  %v2263_v46 = vpack.c.bf16 %v911_v41, %v903_v40  ;;  %v935_v4 = vld [vmem:[#allocation11 + $0xc28] sm:$0xff]  ;;  %v976_v41 = vld [vmem:[#allocation11 + $0xd70] sm:$0xff] }
 0x2de   :  { %1661 = vmatprep.mubr.f32.mxu0 %v2823_v57  ;;  %2244 = vmatprep.subr.bf16.mxu1 %v2243_v47  ;;  %v864_v57 = vld [vmem:[#allocation11 + $0x9f0] sm:$0xff]  ;;  %v902_v47 = vld [vmem:[#allocation11 + $0xb20] sm:$0xff]  ;;  %v2391_v51 = vpack.c.bf16 %v913_v44, %v905_v42  ;;  %v943_v48 = vld [vmem:[#allocation11 + $0xc68] sm:$0xff] }
 0x2df   :  { %2372 = vmatprep.subr.bf16.mxu0 %v2371_v52  ;;  %v2381_v16 = vpack.c.bf16 %v864_v57, %v856_v9  ;;  %v912_v52 = vld [vmem:[#allocation11 + $0xb70] sm:$0xff]  ;;  %v2271_v8 = vpack.c.bf16 %v943_v48, %v935_v4  ;;  %v934_v9 = vld [vmem:[#allocation11 + $0xc20] sm:$0xff]  ;;  %v983_v42 = vld [vmem:[#allocation11 + $0xda8] sm:$0xff] }
 0x2e0   :  { %2246 = vmatpush1.bf16.msra.mxu1 %v2245_v55  ;;  %v921_v55 = vld [vmem:[#allocation11 + $0xbb8] sm:$0xff]  ;;  %v2393_v59 = vpack.c.bf16 %v912_v52, %v904_v50  ;;  %v936_v57 = vld [vmem:[#allocation11 + $0xc30] sm:$0xff]  ;;  %v991_v44 = vld [vmem:[#allocation11 + $0xde8] sm:$0xff] }
 0x2e1   :  { %2374 = vmatpush1.bf16.msra.mxu0 %v2373_v56  ;;  %2248 = vmatprep.subr.bf16.mxu1 %v2247_v58  ;;  %v929_v56 = vld [vmem:[#allocation11 + $0xbf8] sm:$0xff]  ;;  %v2265_v58 = vpack.c.bf16 %v910_v49, %v902_v47  ;;  %v2401_v18 = vpack.c.bf16 %v944_v12, %v936_v57  ;;  %v2409_v47 = vpack.c.bf16 %v976_v41, %v968_v39  ;;  %v982_v50 = vld [vmem:[#allocation11 + $0xda0] sm:$0xff]  ;;  %v984_v52 = vld [vmem:[#allocation11 + $0xdb0] sm:$0xff] }
 0x2e2   :  { %2376 = vmatprep.subr.bf16.mxu0 %v2375_v62  ;;  %v926_v62 = vld [vmem:[#allocation11 + $0xbe0] sm:$0xff]  ;;  %v2395_v0 = vpack.c.bf16 %v929_v56, %v921_v55  ;;  %v2283_v49 = vpack.c.bf16 %v991_v44, %v983_v42  ;;  %v999_v55 = vld [vmem:[#allocation11 + $0xe28] sm:$0xff]  ;;  %v1008_v48 = vld [vmem:[#allocation11 + $0xe70] sm:$0xff] }
 0x2e3   :  { %v1007_v56 = vld [vmem:[#allocation11 + $0xe68] sm:$0xff]  ;;  %v1014_v57 = vld [vmem:[#allocation11 + $0xea0] sm:$0xff]  ;;  %v1016_v12 = vld [vmem:[#allocation11 + $0xeb0] sm:$0xff] }
 0x2e4   :  { %2250 = vmatpush1.bf16.msra.mxu1 %v2249_v22  ;;  %v937_v22 = vld [vmem:[#allocation11 + $0xc38] sm:$0xff]  ;;  %v1046_v39 = vld [vmem:[#allocation11 + $0xfa0] sm:$0xff]  ;;  %v1048_v42 = vld [vmem:[#allocation11 + $0xfb0] sm:$0xff] }
 0x2e5   :  { %2378 = vmatpush1.bf16.msra.mxu0 %v2377_v28  ;;  %2252 = vmatprep.subr.bf16.mxu1 %v2251_v6  ;;  %v945_v28 = vld [vmem:[#allocation11 + $0xc78] sm:$0xff]  ;;  %v2269_v6 = vpack.c.bf16 %v926_v62, %v918_v61  ;;  %v2413_v61 = vpack.c.bf16 %v992_v54, %v984_v52  ;;  %v2287_v62 = vpack.c.bf16 %v1007_v56, %v999_v55  ;;  %v1056_v44 = vld [vmem:[#allocation11 + $0xff0] sm:$0xff] }
 0x2e6   :  { %2380 = vmatprep.subr.bf16.mxu0 %v2379_v10  ;;  %v942_v10 = vld [vmem:[#allocation11 + $0xc60] sm:$0xff]  ;;  %v2399_v11 = vpack.c.bf16 %v945_v28, %v937_v22  ;;  %v1015_v22 = vld [vmem:[#allocation11 + $0xea8] sm:$0xff] }
 0x2e7   :  { %v1023_v28 = vld [vmem:[#allocation11 + $0xee8] sm:$0xff] }
 0x2e8   :  { %2254 = vmatpush1.bf16.msra.mxu1 %v2253_v15  ;;  %v953_v15 = vld [vmem:[#allocation11 + $0xcb8] sm:$0xff] }
 0x2e9   :  { %2382 = vmatpush1.bf16.msra.mxu0 %v2381_v16  ;;  %2256 = vmatprep.subr.bf16.mxu1 %v2255_v17  ;;  %v961_v16 = vld [vmem:[#allocation11 + $0xcf8] sm:$0xff]  ;;  %v2273_v17 = vpack.c.bf16 %v942_v10, %v934_v9  ;;  %v2417_v9 = vpack.c.bf16 %v1008_v48, %v1000_v1  ;;  %v2291_v10 = vpack.c.bf16 %v1023_v28, %v1015_v22  ;;  %v1078_v28 = vsub.s32 4, %v2795_v2 }
 0x2ea   :  { %2384 = vmatprep.subr.bf16.mxu0 %v2383_v21  ;;  %v958_v21 = vld [vmem:[#allocation11 + $0xce0] sm:$0xff]  ;;  %v2403_v25 = vpack.c.bf16 %v961_v16, %v953_v15  ;;  %v1031_v15 = vld [vmem:[#allocation11 + $0xf28] sm:$0xff] }
 0x2eb   :  { %v1039_v16 = vld [vmem:[#allocation11 + $0xf68] sm:$0xff] }
 0x2ec   :  { %2258 = vmatpush1.bf16.msra.mxu1 %v2257_v31  ;;  %v969_v31 = vld [vmem:[#allocation11 + $0xd38] sm:$0xff] }
 0x2ed   :  { %2386 = vmatpush1.bf16.msra.mxu0 %v2385_v32  ;;  %2260 = vmatprep.subr.bf16.mxu1 %v2259_v33  ;;  %v977_v32 = vld [vmem:[#allocation11 + $0xd78] sm:$0xff]  ;;  %v2277_v33 = vpack.c.bf16 %v958_v21, %v950_v20  ;;  %v2421_v20 = vpack.c.bf16 %v1024_v29, %v1016_v12  ;;  %v2295_v21 = vpack.c.bf16 %v1039_v16, %v1031_v15 }
 0x2ee   :  { %2388 = vmatprep.subr.bf16.mxu0 %v2387_v37  ;;  %v974_v37 = vld [vmem:[#allocation11 + $0xd60] sm:$0xff]  ;;  %v2407_v40 = vpack.c.bf16 %v977_v32, %v969_v31  ;;  %v1047_v31 = vld [vmem:[#allocation11 + $0xfa8] sm:$0xff] }
 0x2ef   :  { %v1055_v32 = vld [vmem:[#allocation11 + $0xfe8] sm:$0xff] }
 0x2f0   :  { %2262 = vmatpush1.bf16.msra.mxu1 %v2261_v45  ;;  %v985_v45 = vld [vmem:[#allocation11 + $0xdb8] sm:$0xff] }
 0x2f1   :  { %2390 = vmatpush1.bf16.msra.mxu0 %v2389_v43  ;;  %2264 = vmatprep.subr.bf16.mxu1 %v2263_v46  ;;  %v993_v43 = vld [vmem:[#allocation11 + $0xdf8] sm:$0xff]  ;;  %v2281_v46 = vpack.c.bf16 %v974_v37, %v966_v36  ;;  %v2425_v36 = vpack.c.bf16 %v1040_v30, %v1032_v26  ;;  %v2299_v37 = vpack.c.bf16 %v1055_v32, %v1047_v31 }
 0x2f2   :  { %2392 = vmatprep.subr.bf16.mxu0 %v2391_v51  ;;  %v990_v51 = vld [vmem:[#allocation11 + $0xde0] sm:$0xff]  ;;  %v2411_v53 = vpack.c.bf16 %v993_v43, %v985_v45  ;;  %v2429_v43 = vpack.c.bf16 %v1056_v44, %v1048_v42 }
 0x2f4   :  { %2266 = vmatpush1.bf16.msra.mxu1 %v2265_v58  ;;  %v1001_v58 = vld [vmem:[#allocation11 + $0xe38] sm:$0xff] }
 0x2f5   :  { %2394 = vmatpush1.bf16.msra.mxu0 %v2393_v59  ;;  %2268 = vmatprep.subr.bf16.mxu1 %v2267_v60  ;;  %v1009_v59 = vld [vmem:[#allocation11 + $0xe78] sm:$0xff]  ;;  %v2285_v60 = vpack.c.bf16 %v990_v51, %v982_v50 }
 0x2f6   :  { %2396 = vmatprep.subr.bf16.mxu0 %v2395_v0  ;;  %v1006_v0 = vld [vmem:[#allocation11 + $0xe60] sm:$0xff]  ;;  %v2415_v4 = vpack.c.bf16 %v1009_v59, %v1001_v58 }
 0x2f8   :  { %2270 = vmatpush1.bf16.msra.mxu1 %v2269_v6  ;;  %v1017_v6 = vld [vmem:[#allocation11 + $0xeb8] sm:$0xff] }
 0x2f9   :  { %2398 = vmatpush1.bf16.msra.mxu0 %v2397_v7  ;;  %2272 = vmatprep.subr.bf16.mxu1 %v2271_v8  ;;  %v1025_v7 = vld [vmem:[#allocation11 + $0xef8] sm:$0xff]  ;;  %v2289_v8 = vpack.c.bf16 %v1006_v0, %v998_v63 }
 0x2fa   :  { %2400 = vmatprep.subr.bf16.mxu0 %v2399_v11  ;;  %v1022_v11 = vld [vmem:[#allocation11 + $0xee0] sm:$0xff]  ;;  %v2419_v13 = vpack.c.bf16 %v1025_v7, %v1017_v6  ;;  %v1086_v6 = vsub.s32 6, %v2795_v2  ;;  %v1082_v7 = vsub.s32 5, %v2795_v2 }
 0x2fc   :  { %2274 = vmatpush1.bf16.msra.mxu1 %v2273_v17  ;;  %v1033_v17 = vld [vmem:[#allocation11 + $0xf38] sm:$0xff] }
 0x2fd   :  { %2402 = vmatpush1.bf16.msra.mxu0 %v2401_v18  ;;  %2276 = vmatprep.subr.bf16.mxu1 %v2275_v19  ;;  %v1041_v18 = vld [vmem:[#allocation11 + $0xf78] sm:$0xff]  ;;  %v2293_v19 = vpack.c.bf16 %v1022_v11, %v1014_v57 }
 0x2fe   :  { %2404 = vmatprep.subr.bf16.mxu0 %v2403_v25  ;;  %v1038_v25 = vld [vmem:[#allocation11 + $0xf60] sm:$0xff]  ;;  %v2423_v27 = vpack.c.bf16 %v1041_v18, %v1033_v17 }
 0x300   :  { %2278 = vmatpush1.bf16.msra.mxu1 %v2277_v33  ;;  %v1049_v33 = vld [vmem:[#allocation11 + $0xfb8] sm:$0xff] }
 0x301   :  { %2406 = vmatpush1.bf16.msra.mxu0 %v2405_v34  ;;  %2280 = vmatprep.subr.bf16.mxu1 %v2279_v35  ;;  %v1057_v34 = vld [vmem:[#allocation11 + $0xff8] sm:$0xff]  ;;  %v2297_v35 = vpack.c.bf16 %v1038_v25, %v1030_v24 }
 0x302   :  { %2408 = vmatprep.subr.bf16.mxu0 %v2407_v40  ;;  %v1054_v40 = vld [vmem:[#allocation11 + $0xfe0] sm:$0xff]  ;;  %v2427_v41 = vpack.c.bf16 %v1057_v34, %v1049_v33 }
 0x303   :  { %v2301_v45 = vpack.c.bf16 %v1054_v40, %v1046_v39 }
 0x304   :  { %2282 = vmatpush1.bf16.msra.mxu1 %v2281_v46  ;;  %v1058_v46 = vld [vmem:[#allocation13] sm:$0xff] }
 0x305   :  { %2410 = vmatpush1.bf16.msra.mxu0 %v2409_v47  ;;  %2284 = vmatprep.subr.bf16.mxu1 %v2283_v49  ;;  %v2662_v47 = vmov 1983009808   ;;  %v1063_v50 = vrot.slane %v1058_v46, %v2798_v3  ;;  %v1071_v51 = vrot.slane %v1058_v46, %v390_v38  ;;  %v1067_v52 = vrot.slane %v1058_v46, %v2801_v5 }
 0x306   :  { %2412 = vmatprep.subr.bf16.mxu0 %v2411_v53  ;;  %v1695_v49 = vunpack.c.l.s4 %v2662_v47  ;;  %v1075_v53 = vrot.slane %v1058_v46, %v394_v23  ;;  %v1083_v57 = vrot.slane %v1058_v46, %v1082_v7 }
 0x308   :  { %2286 = vmatpush1.bf16.msra.mxu1 %v2285_v60  ;;  %v1696_v56 = vunpack.c.0.s8 %v1695_v49 }
 0x309   :  { %2414 = vmatpush1.bf16.msra.mxu0 %v2413_v61  ;;  %2288 = vmatprep.subr.bf16.mxu1 %v2287_v62 }
 0x30a   :  { %2416 = vmatprep.subr.bf16.mxu0 %v2415_v4  ;;  %v1699_v1 = vsub.s32 %v1696_v56, %v2795_v2 }
 0x30c   :  { %2290 = vmatpush1.bf16.msra.mxu1 %v2289_v8  ;;  %v1090_v8 = vsub.s32 7, %v2795_v2 }
 0x30d   :  { %2418 = vmatpush1.bf16.msra.mxu0 %v2417_v9  ;;  %2292 = vmatprep.subr.bf16.mxu1 %v2291_v10  ;;  %v1079_v9 = vrot.slane %v1058_v46, %v1078_v28  ;;  %v1087_v10 = vrot.slane %v1058_v46, %v1086_v6 }
 0x30e   :  { %2420 = vmatprep.subr.bf16.mxu0 %v2419_v13  ;;  %v1091_v11 = vrot.slane %v1058_v46, %v1090_v8 }
 0x310   :  { %2294 = vmatpush1.bf16.msra.mxu1 %v2293_v19 }
 0x311   :  { %2422 = vmatpush1.bf16.msra.mxu0 %v2421_v20  ;;  %2296 = vmatprep.subr.bf16.mxu1 %v2295_v21 }
 0x312   :  { %2424 = vmatprep.subr.bf16.mxu0 %v2423_v27 }
 0x314   :  { %2298 = vmatpush1.bf16.msra.mxu1 %v2297_v35 }
 0x315   :  { %2426 = vmatpush1.bf16.msra.mxu0 %v2425_v36  ;;  %2300 = vmatprep.subr.bf16.mxu1 %v2299_v37 }
 0x316   :  { %2428 = vmatprep.subr.bf16.mxu0 %v2427_v41 }
 0x318   :  { %2302 = vmatpush1.bf16.msra.mxu1 %v2301_v45 }
 0x319   :  { %2430 = vmatpush1.bf16.msra.mxu0 %v2429_v43 }
 0x31b   :  { %1520 = vmatmul.mubr.f32.vlgmr.msra.gmra.mrb[4].mxu1 %v2834_v14 }
 0x31c   :  { %1662 = vmatmul.mubr.f32.vlgmr.msra.gmra.mrb[6].mxu0 %v2834_v14 }
 0x36e   :  { %v1237_v54 = vpop.f32.mrb[2].mxu1  ;;  %v1379_v55 = vpop.f32.mrb[4].mxu0 }
 0x36f   :  { %v2431_v58 = vadd.f32 %v1237_v54, %v1063_v50  ;;  %v2433_v59 = vadd.f32 %v1379_v55, %v1071_v51  ;;  %v1239_v60 = vpop.f32.mrb[3].mxu1  ;;  %v1381_v14 = vpop.f32.mrb[5].mxu0 }
 0x370   :  { %v2432_v61 = vadd.f32 %v1239_v60, %v1067_v52  ;;  %v2434_v62 = vadd.f32 %v1381_v14, %v1075_v53 }
 0x371   :  { %v1668_v63 = vmax.f32 %v2431_v58, 0.0  ;;  %v1670_v0 = vmax.f32 %v2433_v59, 0.0 }
 0x372   :  { %v1669_v3 = vmax.f32 %v2432_v61, 0.0  ;;  %v1671_v38 = vmax.f32 %v2434_v62, 0.0 }
 0x374   :  { %v1751_v4 = vpack.c.bf16 %v1669_v3, %v1668_v63  ;;  %v1752_v5 = vpack.c.bf16 %v1671_v38, %v1670_v0 }
 0x376   :  { %v1700_v48 = vrot.slane %v1751_v4, %v1699_v1  ;;  %v1707_v22 = vrot.slane %v1752_v5, %v1699_v1 }
 0x378   :  { %v1708_v23 = vcombine.low %v1700_v48, %v1707_v22 }
 0x37a   :  { %1728 = vst [vmem:[#allocation14] sm:$0xff] %v1708_v23 }
 0x3ee   :  { %v1521_v12 = vpop.f32.mrb[4].mxu1 }
 0x3ef   :  { %v2435_v13 = vadd.f32 %v1521_v12, %v1079_v9  ;;  %v1663_v29 = vpop.f32.mrb[6].mxu0  ;;  %v1523_v15 = vpop.f32.mrb[5].mxu1 }
 0x3f0   :  { %v2437_v16 = vadd.f32 %v1663_v29, %v1087_v10  ;;  %v2436_v17 = vadd.f32 %v1523_v15, %v1083_v57  ;;  %v1665_v18 = vpop.f32.mrb[7].mxu0 }
 0x3f1   :  { %v1672_v19 = vmax.f32 %v2435_v13, 0.0  ;;  %v2438_v20 = vadd.f32 %v1665_v18, %v1091_v11 }
 0x3f2   :  { %v1674_v21 = vmax.f32 %v2437_v16, 0.0  ;;  %v1673_v24 = vmax.f32 %v2436_v17, 0.0 }
 0x3f3   :  { %v1675_v25 = vmax.f32 %v2438_v20, 0.0 }
 0x3f4   :  { %v1753_v26 = vpack.c.bf16 %v1673_v24, %v1672_v19 }
 0x3f5   :  { %v1754_v27 = vpack.c.bf16 %v1675_v25, %v1674_v21 }
 0x3f6   :  { %v1717_v30 = vrot.slane %v1753_v26, %v1699_v1 }
 0x3f7   :  { %v1724_v2 = vrot.slane %v1754_v27, %v1699_v1 }
 0x3f9   :  { %v1725_v31 = vcombine.low %v1717_v30, %v1724_v2 }
 0x3fb   :  { %1729 = vst [vmem:[#allocation14 + $0x8] sm:$0xff] %v1725_v31 }
 0x3fc   :  { %2628 = shalt.err (!%p2625_p4)
}
 0x3fd   :  { %s2629_s3 = scalar_lea.hbm %s2876_s7, 256 }
 0x3fe   :  { %p2630_p5 = scmp.ne.s32.totalorder %s2876_s7, %s2629_s3  ;;  %p2633_p6 = scmp.lt.u32.totalorder %s2629_s3, %s2876_s7 }
 0x400   :  { %p2635_p7 = pnand %p2633_p6, %p2630_p5 }
 0x402   :  { %2638 = shalt.err (!%p2635_p7)
}
 0x403   :  { %1739 = dma.vmem_to_hbm [thread:$0]  %s1737_s12, 256, %s2876_s7, [#allocation4]  }
 0x404   :  { %2647 = dma.done.wait [#allocation4], 256  }
 0x405   :  { %2648 = vsyncadd [#allocation4], 4294967040 }
 0x406   :  { %1743 = vsyncpa [#allocation3], 1 }
 0x407   :  { %1744 = vsyncpa [#allocation6], 1 }
 0x408   :  { %1745 = vsyncpa [#allocation9], 1 }
 0x409   :  { %1746 = vsyncpa [#allocation12], 1 }
 0x40a   :  { %1747 = vsyncpa [#allocation4], 1 }

</bundles_post_ra>
